<compile_context>
chip_gen: v6e
topology: v6e:2x2x1
jax: 0.10.0
libtpu: 0.0.40
codegen_flags: <defaults>
</compile_context>

<pallas_src>
import jax
import jax.numpy as jnp
from jax.experimental import pallas as pl
from jax.experimental.pallas import tpu as pltpu


# ------------------------------ fused kernel -------------------------------


def _down_conv_kernel(xw_ref, w1_ref, b1_ref, w2_ref, b2_ref, o_ref,
                      pad1_ref, pad2_ref):
    # xw_ref : (4, 1, H2, W2, Cin)  four 2x2-window positions of x, channels last
    # w1_ref : (9*Cin, Cout)        conv1 taps, row index = (3*dy+dx)*Cin + ci
    # b1_ref : (1, Cout)
    # w2_ref : (9*Cout, Cout)       conv2 taps, row index = (3*dy+dx)*Cout + ci
    # b2_ref : (1, Cout)
    # o_ref  : (1, Cout, H2*W2)     channel-major flat output (NCHW-compatible)
    # pad1_ref / pad2_ref : VMEM scratch (H2+2, W2+2, Cin/Cout), zero-padded acts
    Hp, Wp, _ = pad1_ref.shape
    H2, W2 = Hp - 2, Wp - 2
    HW = H2 * W2
    Cout = w1_ref.shape[1]

    # ---- 2x2 max pool: elementwise max of the four stacked window positions ----
    pooled = jnp.maximum(jnp.maximum(xw_ref[0, 0], xw_ref[1, 0]),
                         jnp.maximum(xw_ref[2, 0], xw_ref[3, 0]))   # (H2, W2, Cin)

    def conv3x3_relu(pad_ref, act, w_ref, b_ref):
        cin = pad_ref.shape[-1]
        # 'same' zero padding into VMEM scratch
        pad_ref[...] = jnp.zeros_like(pad_ref)
        pad_ref[1:H2 + 1, 1:W2 + 1, :] = act
        # im2col: concat the 9 shifted views on the lane axis -> one MXU matmul
        taps = [pad_ref[dy:dy + H2, dx:dx + W2, :].reshape(HW, cin)
                for dy in range(3) for dx in range(3)]
        col = jnp.concatenate(taps, axis=-1)                        # (HW, 9*cin)
        out = jnp.dot(col, w_ref[...], preferred_element_type=jnp.float32)
        return jnp.maximum(out + b_ref[...], 0.0)                   # (HW, Cout)

    a1 = conv3x3_relu(pad1_ref, pooled, w1_ref, b1_ref)             # (HW, Cout)
    a2 = conv3x3_relu(pad2_ref, a1.reshape(H2, W2, Cout), w2_ref, b2_ref)

    # channel-major store so the wrapper only needs a free reshape to NCHW
    o_ref[0] = a2.T.astype(o_ref.dtype)                             # (Cout, HW)


# ------------------------------- JAX wrapper --------------------------------


def down_convolution(x_nchw, params):
    B, Cin, H, W = x_nchw.shape
    Cout = params["w1"].shape[0]
    H2, W2 = H // 2, W // 2          # floor-crop like nn.MaxPool2d(2)
    HW = H2 * W2

    # Host glue (one small copy): stack the 4 pool-window positions, channels last.
    xc = x_nchw[:, :, :2 * H2, :2 * W2]
    xw = xc.reshape(B, Cin, H2, 2, W2, 2).transpose(3, 5, 0, 2, 4, 1)
    xw = xw.reshape(4, B, H2, W2, Cin)

    # One-time tiny weight/bias re-layout: (Cout, Cin, 3, 3) -> (9*Cin, Cout)
    w1m = jnp.transpose(params["w1"], (2, 3, 1, 0)).reshape(9 * Cin, Cout)
    w2m = jnp.transpose(params["w2"], (2, 3, 1, 0)).reshape(9 * Cout, Cout)
    b1 = params["b1"].reshape(1, Cout)
    b2 = params["b2"].reshape(1, Cout)

    out_flat = pl.pallas_call(
        _down_conv_kernel,
        out_shape=jax.ShapeDtypeStruct((B, Cout, HW), x_nchw.dtype),
        grid=(B,),
        in_specs=[
            pl.BlockSpec((4, 1, H2, W2, Cin), lambda b: (0, b, 0, 0, 0)),
            pl.BlockSpec((9 * Cin, Cout), lambda b: (0, 0)),
            pl.BlockSpec((1, Cout), lambda b: (0, 0)),
            pl.BlockSpec((9 * Cout, Cout), lambda b: (0, 0)),
            pl.BlockSpec((1, Cout), lambda b: (0, 0)),
        ],
        out_specs=pl.BlockSpec((1, Cout, HW), lambda b: (b, 0, 0)),
        scratch_shapes=[
            pltpu.VMEM((H2 + 2, W2 + 2, Cin), jnp.float32),
            pltpu.VMEM((H2 + 2, W2 + 2, Cout), jnp.float32),
        ],
        compiler_params=pltpu.CompilerParams(
            dimension_semantics=("parallel",)),
    )(xw, w1m, b1, w2m, b2)

    out = out_flat.reshape(B, Cout, H2, W2)        # free metadata reshape -> NCHW
    # TODO(synk): nn.Dropout(0.2) is stochastic; applied as inference-mode identity.
    return out


# --------------------------- deterministic params ---------------------------


def init_params(key, cin, cout):
    k1, k2, k3, k4 = jax.random.split(key, 4)
    s1 = 1.0 / (cin * 9.0) ** 0.5
    s2 = 1.0 / (cout * 9.0) ** 0.5
    return {
        "w1": jax.random.uniform(k1, (cout, cin, 3, 3), jnp.float32, -s1, s1),
        "b1": jax.random.uniform(k2, (cout,), jnp.float32, -s1, s1),
        "w2": jax.random.uniform(k3, (cout, cout, 3, 3), jnp.float32, -s2, s2),
        "b2": jax.random.uniform(k4, (cout,), jnp.float32, -s2, s2),
    }


def reference(x_nchw, p):
    B, C, H, W = x_nchw.shape
    pooled = x_nchw.reshape(B, C, H // 2, 2, W // 2, 2).max(axis=(3, 5))

    def conv(y, w, b):
        out = jax.lax.conv_general_dilated(
            y, w, window_strides=(1, 1), padding="SAME",
            dimension_numbers=("NCHW", "OIHW", "NCHW"))
        return jax.nn.relu(out + b[None, :, None, None])

    y = conv(pooled, p["w1"], p["b1"])
    y = conv(y, p["w2"], p["b2"])
    return y


if __name__ == "__main__":
    key = jax.random.PRNGKey(0)
    kx, kp = jax.random.split(key)

    B, Cin, Cout, H, W = 2, 4, 8, 16, 16
    x = jax.random.normal(kx, (B, Cin, H, W), dtype=jnp.float32)
    params = init_params(kp, Cin, Cout)

    out = jax.jit(down_convolution)(x, params)
    out = jax.block_until_ready(out)

    ref = reference(x, params)
    assert out.shape == (B, Cout, H // 2, W // 2), out.shape
    assert jnp.allclose(out, ref, atol=1e-4, rtol=1e-4), float(jnp.max(jnp.abs(out - ref)))

    print("KERNEL_OK")
</pallas_src>

<mosaic_0001>
module attributes {stable_mosaic.version = 11 : i64} {
  func.func @_down_conv_kernel(%arg0: i32, %arg1: memref<4x1x8x8x4xf32, #tpu.memory_space<vmem>>, %arg2: memref<36x8xf32, #tpu.memory_space<vmem>>, %arg3: memref<1x8xf32, #tpu.memory_space<vmem>>, %arg4: memref<72x8xf32, #tpu.memory_space<vmem>>, %arg5: memref<1x8xf32, #tpu.memory_space<vmem>>, %arg6: memref<1x8x64xf32, #tpu.memory_space<vmem>>, %arg7: memref<10x10x4xf32, #tpu.memory_space<vmem>>, %arg8: memref<10x10x8xf32, #tpu.memory_space<vmem>>) attributes {dimension_semantics = [#tpu.dimension_semantics<parallel>], iteration_bounds = array<i64: 2>, scalar_prefetch = 0 : i64, scratch_operands = 2 : i64, tpu.core_type = #tpu.core_type<tc>, window_params = [{transform_indices = @transform_0, window_bounds = array<i64: 4, 1, 8, 8, 4>}, {pipeline_mode = #tpu.pipeline_mode<synchronous>, transform_indices = @transform_1, window_bounds = array<i64: 36, 8>}, {pipeline_mode = #tpu.pipeline_mode<synchronous>, transform_indices = @transform_2, window_bounds = array<i64: 1, 8>}, {pipeline_mode = #tpu.pipeline_mode<synchronous>, transform_indices = @transform_3, window_bounds = array<i64: 72, 8>}, {pipeline_mode = #tpu.pipeline_mode<synchronous>, transform_indices = @transform_4, window_bounds = array<i64: 1, 8>}, {transform_indices = @transform_5, window_bounds = array<i64: 1, 8, 64>}]} {
    %c0 = arith.constant 0 : index
    %c0_0 = arith.constant 0 : index
    %c0_1 = arith.constant 0 : index
    %c0_2 = arith.constant 0 : index
    %c0_3 = arith.constant 0 : index
    %0 = vector.load %arg1[%c0, %c0_0, %c0_1, %c0_2, %c0_3] : memref<4x1x8x8x4xf32, #tpu.memory_space<vmem>>, vector<1x1x8x8x4xf32>
    %1 = vector.shape_cast %0 : vector<1x1x8x8x4xf32> to vector<8x8x4xf32>
    %c1 = arith.constant 1 : index
    %c0_4 = arith.constant 0 : index
    %c0_5 = arith.constant 0 : index
    %c0_6 = arith.constant 0 : index
    %c0_7 = arith.constant 0 : index
    %2 = vector.load %arg1[%c1, %c0_4, %c0_5, %c0_6, %c0_7] : memref<4x1x8x8x4xf32, #tpu.memory_space<vmem>>, vector<1x1x8x8x4xf32>
    %3 = vector.shape_cast %2 : vector<1x1x8x8x4xf32> to vector<8x8x4xf32>
    %4 = arith.maximumf %1, %3 : vector<8x8x4xf32>
    %c2 = arith.constant 2 : index
    %c0_8 = arith.constant 0 : index
    %c0_9 = arith.constant 0 : index
    %c0_10 = arith.constant 0 : index
    %c0_11 = arith.constant 0 : index
    %5 = vector.load %arg1[%c2, %c0_8, %c0_9, %c0_10, %c0_11] : memref<4x1x8x8x4xf32, #tpu.memory_space<vmem>>, vector<1x1x8x8x4xf32>
    %6 = vector.shape_cast %5 : vector<1x1x8x8x4xf32> to vector<8x8x4xf32>
    %c3 = arith.constant 3 : index
    %c0_12 = arith.constant 0 : index
    %c0_13 = arith.constant 0 : index
    %c0_14 = arith.constant 0 : index
    %c0_15 = arith.constant 0 : index
    %7 = vector.load %arg1[%c3, %c0_12, %c0_13, %c0_14, %c0_15] : memref<4x1x8x8x4xf32, #tpu.memory_space<vmem>>, vector<1x1x8x8x4xf32>
    %8 = vector.shape_cast %7 : vector<1x1x8x8x4xf32> to vector<8x8x4xf32>
    %9 = arith.maximumf %6, %8 : vector<8x8x4xf32>
    %10 = arith.maximumf %4, %9 : vector<8x8x4xf32>
    %cst = arith.constant 0.000000e+00 : f32
    %11 = vector.broadcast %cst : f32 to vector<10x10x4xf32>
    %c0_16 = arith.constant 0 : index
    %c0_17 = arith.constant 0 : index
    %c0_18 = arith.constant 0 : index
    %12 = vector.load %arg7[%c0_16, %c0_17, %c0_18] : memref<10x10x4xf32, #tpu.memory_space<vmem>>, vector<10x10x4xf32>
    tpu.vector_store %arg7[%c0_16, %c0_17, %c0_18], %11 {strides = array<i32>} : memref<10x10x4xf32, #tpu.memory_space<vmem>>, vector<10x10x4xf32>,
    %c1_19 = arith.constant 1 : index
    %c1_20 = arith.constant 1 : index
    %c0_21 = arith.constant 0 : index
    %13 = vector.load %arg7[%c1_19, %c1_20, %c0_21] : memref<10x10x4xf32, #tpu.memory_space<vmem>>, vector<8x8x4xf32>
    tpu.vector_store %arg7[%c1_19, %c1_20, %c0_21], %10 {strides = array<i32>} : memref<10x10x4xf32, #tpu.memory_space<vmem>>, vector<8x8x4xf32>,
    %c0_22 = arith.constant 0 : index
    %c0_23 = arith.constant 0 : index
    %c0_24 = arith.constant 0 : index
    %14 = vector.load %arg7[%c0_22, %c0_23, %c0_24] : memref<10x10x4xf32, #tpu.memory_space<vmem>>, vector<8x8x4xf32>
    %15 = vector.shape_cast %14 : vector<8x8x4xf32> to vector<64x4xf32>
    %c0_25 = arith.constant 0 : index
    %c1_26 = arith.constant 1 : index
    %c0_27 = arith.constant 0 : index
    %16 = vector.load %arg7[%c0_25, %c1_26, %c0_27] : memref<10x10x4xf32, #tpu.memory_space<vmem>>, vector<8x8x4xf32>
    %17 = vector.shape_cast %16 : vector<8x8x4xf32> to vector<64x4xf32>
    %c0_28 = arith.constant 0 : index
    %c2_29 = arith.constant 2 : index
    %c0_30 = arith.constant 0 : index
    %18 = vector.load %arg7[%c0_28, %c2_29, %c0_30] : memref<10x10x4xf32, #tpu.memory_space<vmem>>, vector<8x8x4xf32>
    %19 = vector.shape_cast %18 : vector<8x8x4xf32> to vector<64x4xf32>
    %c1_31 = arith.constant 1 : index
    %c0_32 = arith.constant 0 : index
    %c0_33 = arith.constant 0 : index
    %20 = vector.load %arg7[%c1_31, %c0_32, %c0_33] : memref<10x10x4xf32, #tpu.memory_space<vmem>>, vector<8x8x4xf32>
    %21 = vector.shape_cast %20 : vector<8x8x4xf32> to vector<64x4xf32>
    %c1_34 = arith.constant 1 : index
    %c1_35 = arith.constant 1 : index
    %c0_36 = arith.constant 0 : index
    %22 = vector.load %arg7[%c1_34, %c1_35, %c0_36] : memref<10x10x4xf32, #tpu.memory_space<vmem>>, vector<8x8x4xf32>
    %23 = vector.shape_cast %22 : vector<8x8x4xf32> to vector<64x4xf32>
    %c1_37 = arith.constant 1 : index
    %c2_38 = arith.constant 2 : index
    %c0_39 = arith.constant 0 : index
    %24 = vector.load %arg7[%c1_37, %c2_38, %c0_39] : memref<10x10x4xf32, #tpu.memory_space<vmem>>, vector<8x8x4xf32>
    %25 = vector.shape_cast %24 : vector<8x8x4xf32> to vector<64x4xf32>
    %c2_40 = arith.constant 2 : index
    %c0_41 = arith.constant 0 : index
    %c0_42 = arith.constant 0 : index
    %26 = vector.load %arg7[%c2_40, %c0_41, %c0_42] : memref<10x10x4xf32, #tpu.memory_space<vmem>>, vector<8x8x4xf32>
    %27 = vector.shape_cast %26 : vector<8x8x4xf32> to vector<64x4xf32>
    %c2_43 = arith.constant 2 : index
    %c1_44 = arith.constant 1 : index
    %c0_45 = arith.constant 0 : index
    %28 = vector.load %arg7[%c2_43, %c1_44, %c0_45] : memref<10x10x4xf32, #tpu.memory_space<vmem>>, vector<8x8x4xf32>
    %29 = vector.shape_cast %28 : vector<8x8x4xf32> to vector<64x4xf32>
    %c2_46 = arith.constant 2 : index
    %c2_47 = arith.constant 2 : index
    %c0_48 = arith.constant 0 : index
    %30 = vector.load %arg7[%c2_46, %c2_47, %c0_48] : memref<10x10x4xf32, #tpu.memory_space<vmem>>, vector<8x8x4xf32>
    %31 = vector.shape_cast %30 : vector<8x8x4xf32> to vector<64x4xf32>
    %32 = tpu.concatenate %15, %17, %19, %21, %23, %25, %27, %29, %31 in 1 : vector<64x4xf32>, vector<64x4xf32>, vector<64x4xf32>, vector<64x4xf32>, vector<64x4xf32>, vector<64x4xf32>, vector<64x4xf32>, vector<64x4xf32>, vector<64x4xf32> -> vector<64x36xf32>
    %c0_49 = arith.constant 0 : index
    %c0_50 = arith.constant 0 : index
    %33 = vector.load %arg2[%c0_49, %c0_50] : memref<36x8xf32, #tpu.memory_space<vmem>>, vector<36x8xf32>
    %cst_51 = arith.constant dense<0.000000e+00> : vector<64x8xf32>
    %34 = tpu.matmul %32, %33, %cst_51 {dimension_numbers = #tpu.dot_dimension_numbers<[1], [0], [0], [1], [0, 0, 1, 1], [], []>} : vector<64x36xf32>, vector<36x8xf32>, vector<64x8xf32> -> vector<64x8xf32>
    %c0_52 = arith.constant 0 : index
    %c0_53 = arith.constant 0 : index
    %35 = vector.load %arg3[%c0_52, %c0_53] : memref<1x8xf32, #tpu.memory_space<vmem>>, vector<1x8xf32>
    %36 = vector.broadcast %35 : vector<1x8xf32> to vector<64x8xf32>
    %37 = arith.addf %34, %36 : vector<64x8xf32>
    %cst_54 = arith.constant 0.000000e+00 : f32
    %38 = vector.broadcast %cst_54 : f32 to vector<64x8xf32>
    %39 = arith.maximumf %37, %38 : vector<64x8xf32>
    %40 = vector.shape_cast %39 : vector<64x8xf32> to vector<8x8x8xf32>
    %cst_55 = arith.constant 0.000000e+00 : f32
    %41 = vector.broadcast %cst_55 : f32 to vector<10x10x8xf32>
    %c0_56 = arith.constant 0 : index
    %c0_57 = arith.constant 0 : index
    %c0_58 = arith.constant 0 : index
    %42 = vector.load %arg8[%c0_56, %c0_57, %c0_58] : memref<10x10x8xf32, #tpu.memory_space<vmem>>, vector<10x10x8xf32>
    tpu.vector_store %arg8[%c0_56, %c0_57, %c0_58], %41 {strides = array<i32>} : memref<10x10x8xf32, #tpu.memory_space<vmem>>, vector<10x10x8xf32>,
    %c1_59 = arith.constant 1 : index
    %c1_60 = arith.constant 1 : index
    %c0_61 = arith.constant 0 : index
    %43 = vector.load %arg8[%c1_59, %c1_60, %c0_61] : memref<10x10x8xf32, #tpu.memory_space<vmem>>, vector<8x8x8xf32>
    tpu.vector_store %arg8[%c1_59, %c1_60, %c0_61], %40 {strides = array<i32>} : memref<10x10x8xf32, #tpu.memory_space<vmem>>, vector<8x8x8xf32>,
    %c0_62 = arith.constant 0 : index
    %c0_63 = arith.constant 0 : index
    %c0_64 = arith.constant 0 : index
    %44 = vector.load %arg8[%c0_62, %c0_63, %c0_64] : memref<10x10x8xf32, #tpu.memory_space<vmem>>, vector<8x8x8xf32>
    %45 = vector.shape_cast %44 : vector<8x8x8xf32> to vector<64x8xf32>
    %c0_65 = arith.constant 0 : index
    %c1_66 = arith.constant 1 : index
    %c0_67 = arith.constant 0 : index
    %46 = vector.load %arg8[%c0_65, %c1_66, %c0_67] : memref<10x10x8xf32, #tpu.memory_space<vmem>>, vector<8x8x8xf32>
    %47 = vector.shape_cast %46 : vector<8x8x8xf32> to vector<64x8xf32>
    %c0_68 = arith.constant 0 : index
    %c2_69 = arith.constant 2 : index
    %c0_70 = arith.constant 0 : index
    %48 = vector.load %arg8[%c0_68, %c2_69, %c0_70] : memref<10x10x8xf32, #tpu.memory_space<vmem>>, vector<8x8x8xf32>
    %49 = vector.shape_cast %48 : vector<8x8x8xf32> to vector<64x8xf32>
    %c1_71 = arith.constant 1 : index
    %c0_72 = arith.constant 0 : index
    %c0_73 = arith.constant 0 : index
    %50 = vector.load %arg8[%c1_71, %c0_72, %c0_73] : memref<10x10x8xf32, #tpu.memory_space<vmem>>, vector<8x8x8xf32>
    %51 = vector.shape_cast %50 : vector<8x8x8xf32> to vector<64x8xf32>
    %c1_74 = arith.constant 1 : index
    %c1_75 = arith.constant 1 : index
    %c0_76 = arith.constant 0 : index
    %52 = vector.load %arg8[%c1_74, %c1_75, %c0_76] : memref<10x10x8xf32, #tpu.memory_space<vmem>>, vector<8x8x8xf32>
    %53 = vector.shape_cast %52 : vector<8x8x8xf32> to vector<64x8xf32>
    %c1_77 = arith.constant 1 : index
    %c2_78 = arith.constant 2 : index
    %c0_79 = arith.constant 0 : index
    %54 = vector.load %arg8[%c1_77, %c2_78, %c0_79] : memref<10x10x8xf32, #tpu.memory_space<vmem>>, vector<8x8x8xf32>
    %55 = vector.shape_cast %54 : vector<8x8x8xf32> to vector<64x8xf32>
    %c2_80 = arith.constant 2 : index
    %c0_81 = arith.constant 0 : index
    %c0_82 = arith.constant 0 : index
    %56 = vector.load %arg8[%c2_80, %c0_81, %c0_82] : memref<10x10x8xf32, #tpu.memory_space<vmem>>, vector<8x8x8xf32>
    %57 = vector.shape_cast %56 : vector<8x8x8xf32> to vector<64x8xf32>
    %c2_83 = arith.constant 2 : index
    %c1_84 = arith.constant 1 : index
    %c0_85 = arith.constant 0 : index
    %58 = vector.load %arg8[%c2_83, %c1_84, %c0_85] : memref<10x10x8xf32, #tpu.memory_space<vmem>>, vector<8x8x8xf32>
    %59 = vector.shape_cast %58 : vector<8x8x8xf32> to vector<64x8xf32>
    %c2_86 = arith.constant 2 : index
    %c2_87 = arith.constant 2 : index
    %c0_88 = arith.constant 0 : index
    %60 = vector.load %arg8[%c2_86, %c2_87, %c0_88] : memref<10x10x8xf32, #tpu.memory_space<vmem>>, vector<8x8x8xf32>
    %61 = vector.shape_cast %60 : vector<8x8x8xf32> to vector<64x8xf32>
    %62 = tpu.concatenate %45, %47, %49, %51, %53, %55, %57, %59, %61 in 1 : vector<64x8xf32>, vector<64x8xf32>, vector<64x8xf32>, vector<64x8xf32>, vector<64x8xf32>, vector<64x8xf32>, vector<64x8xf32>, vector<64x8xf32>, vector<64x8xf32> -> vector<64x72xf32>
    %c0_89 = arith.constant 0 : index
    %c0_90 = arith.constant 0 : index
    %63 = vector.load %arg4[%c0_89, %c0_90] : memref<72x8xf32, #tpu.memory_space<vmem>>, vector<72x8xf32>
    %cst_91 = arith.constant dense<0.000000e+00> : vector<64x8xf32>
    %64 = tpu.matmul %62, %63, %cst_91 {dimension_numbers = #tpu.dot_dimension_numbers<[1], [0], [0], [1], [0, 0, 1, 1], [], []>} : vector<64x72xf32>, vector<72x8xf32>, vector<64x8xf32> -> vector<64x8xf32>
    %c0_92 = arith.constant 0 : index
    %c0_93 = arith.constant 0 : index
    %65 = vector.load %arg5[%c0_92, %c0_93] : memref<1x8xf32, #tpu.memory_space<vmem>>, vector<1x8xf32>
    %66 = vector.broadcast %65 : vector<1x8xf32> to vector<64x8xf32>
    %67 = arith.addf %64, %66 : vector<64x8xf32>
    %cst_94 = arith.constant 0.000000e+00 : f32
    %68 = vector.broadcast %cst_94 : f32 to vector<64x8xf32>
    %69 = arith.maximumf %67, %68 : vector<64x8xf32>
    %70 = tpu.transpose %69, [1, 0] : vector<64x8xf32> -> vector<8x64xf32>
    %c0_95 = arith.constant 0 : index
    %c0_96 = arith.constant 0 : index
    %c0_97 = arith.constant 0 : index
    %71 = vector.load %arg6[%c0_95, %c0_96, %c0_97] : memref<1x8x64xf32, #tpu.memory_space<vmem>>, vector<1x8x64xf32>
    %72 = vector.shape_cast %71 : vector<1x8x64xf32> to vector<8x64xf32>
    %73 = vector.shape_cast %70 : vector<8x64xf32> to vector<1x8x64xf32>
    tpu.vector_store %arg6[%c0_95, %c0_96, %c0_97], %73 {strides = array<i32>} : memref<1x8x64xf32, #tpu.memory_space<vmem>>, vector<1x8x64xf32>,
    return
  }
  func.func @transform_0(%arg0: i32) -> (i32, i32, i32, i32, i32) {
    %c0_i32 = arith.constant 0 : i32
    %c0_i32_0 = arith.constant 0 : i32
    %c0_i32_1 = arith.constant 0 : i32
    %c0_i32_2 = arith.constant 0 : i32
    %c0_i32_3 = arith.constant 0 : i32
    return %c0_i32, %arg0, %c0_i32_0, %c0_i32_1, %c0_i32_2 : i32, i32, i32, i32, i32
  }
  func.func @transform_1(%arg0: i32) -> (i32, i32) {
    %c0_i32 = arith.constant 0 : i32
    %c0_i32_0 = arith.constant 0 : i32
    %c0_i32_1 = arith.constant 0 : i32
    return %c0_i32, %c0_i32_0 : i32, i32
  }
  func.func @transform_2(%arg0: i32) -> (i32, i32) {
    %c0_i32 = arith.constant 0 : i32
    %c0_i32_0 = arith.constant 0 : i32
    %c0_i32_1 = arith.constant 0 : i32
    return %c0_i32, %c0_i32_0 : i32, i32
  }
  func.func @transform_3(%arg0: i32) -> (i32, i32) {
    %c0_i32 = arith.constant 0 : i32
    %c0_i32_0 = arith.constant 0 : i32
    %c0_i32_1 = arith.constant 0 : i32
    return %c0_i32, %c0_i32_0 : i32, i32
  }
  func.func @transform_4(%arg0: i32) -> (i32, i32) {
    %c0_i32 = arith.constant 0 : i32
    %c0_i32_0 = arith.constant 0 : i32
    %c0_i32_1 = arith.constant 0 : i32
    return %c0_i32, %c0_i32_0 : i32, i32
  }
  func.func @transform_5(%arg0: i32) -> (i32, i32, i32) {
    %c0_i32 = arith.constant 0 : i32
    %c0_i32_0 = arith.constant 0 : i32
    %c0_i32_1 = arith.constant 0 : i32
    return %arg0, %c0_i32, %c0_i32_0 : i32, i32, i32
  }
}

</mosaic_0001>

<bundles_post_ra>
// kernel: down_convolution.1
= control target key start
LH: loop header
LB: loop body
LE: loop exit
PB: predicated region body
PF: predicated region fallthrough
CT: control target
= control target key end

     0   :  { %s1942_s18 = smov 0   ;;  %s1944_s19 = smov 0   ;;  %s2589_s0 = inlined_call_operand.vmem [shape: f32[4,2,8,8,4], index: 0, kind: input, shape index: {}]   ;;  %s2590_s1 = inlined_call_operand.vmem [shape: f32[36,8], index: 1, kind: input, shape index: {}]   ;;  %s2591_s2 = inlined_call_operand.vmem [shape: f32[1,8], index: 2, kind: input, shape index: {}]   ;;  %s2592_s3 = inlined_call_operand.vmem [shape: f32[72,8], index: 3, kind: input, shape index: {}]   ;;  %s2593_s4 = inlined_call_operand.vmem [shape: f32[1,8], index: 4, kind: input, shape index: {}]   ;;  %s2594_s5 = inlined_call_operand.vmem [shape: f32[2,8,64], index: 5, kind: output, shape index: {}]  }
   0x1   :  { %s1946_s20 = smov 0  }
   0x2 LB: > { %s1700_s21 = sadd.s32 4294967295, %s1897_s20   ;;  %s1959_s22 = sadd.s32 1, %s1897_s20   ;;  %s1897_s20 = sphi %s1946_s20, %s2597_s20   ;;  %s1893_s19 = sphi %s1944_s19, %s2596_s19   ;;  %s1889_s18 = sphi %s1942_s18, %s2595_s18  }
   0x3   : > { %s19_s23 = ssub.s32 %s1897_s20, %s1959_s22  ;;  %s22_s24 = sadd.s32 1, %s1893_s19 }
   0x4   : > { %p20_p0 = scmp.eq.s32.totalorder %s19_s23, 0  ;;  %p29_p1 = scmp.ne.s32.totalorder %s1893_s19, %s1889_s18 }
   0x5   : > { %p30_p2 = scmp.eq.s32.totalorder %s1897_s20, 0  ;;  %p1703_p4 = scmp.ge.s32.totalorder %s1897_s20, 2 }
   0x6   : > { %s1968_s25 = scalar_select %p20_p0, %s1893_s19, %s22_s24  }
   0x7   : > { %p31_p3 = por %p30_p2, %p29_p1  ;;  %177 = sbr.rel (%p1703_p4) target bundleno = 32 (0x20), region = 32 }
   0xc   : > { %180 = sbr.rel (!%p31_p3) target bundleno = 32 (0x20), region = 36  ;;  %s182_s26 = sand.u32 (%p31_p3), 1, %s1893_s19  }
   0xd   : > { %s1755_s27 = sshll.u32 (%p31_p3), %s1897_s20, 6  ;;  %s1704_s28 = sshll.u32 (%p31_p3), %s182_s26, 8 }
   0xe   : > { %s1976_s6 = scalar_lea.vmem (%p31_p3), %s2589_s0, %s1755_s27  ;;  %s1981_s7 = scalar_lea.vmem (%p31_p3), [#allocation4], %s1704_s28 }
   0xf   : > { %v278_v0 = vld [vmem:[%s1976_s6] sm:$0xff] (%p31_p3)  ;;  %v280_v1 = vld [vmem:[%s1976_s6 + $0x8] sm:$0xff] (%p31_p3)  ;;  %v282_v2 = vld [vmem:[%s1976_s6 + $0x10] sm:$0xff] (%p31_p3) }
  0x10   : > { %279 = vst [vmem:[%s1981_s7] sm:$0xff] (%p31_p3), %v278_v0  ;;  %281 = vst [vmem:[%s1981_s7 + $0x8] sm:$0xff] (%p31_p3), %v280_v1  ;;  %v284_v3 = vld [vmem:[%s1976_s6 + $0x18] sm:$0xff] (%p31_p3)  ;;  %v286_v4 = vld [vmem:[%s1976_s6 + $0x20] sm:$0xff] (%p31_p3) }
  0x11   : > { %283 = vst [vmem:[%s1981_s7 + $0x10] sm:$0xff] %v282_v2  ;;  %v288_v5 = vld [vmem:[%s1976_s6 + $0x28] sm:$0xff]  ;;  %285 = vst [vmem:[%s1981_s7 + $0x18] sm:$0xff] %v284_v3  ;;  %v290_v6 = vld [vmem:[%s1976_s6 + $0x30] sm:$0xff] }
  0x12   : > { %287 = vst [vmem:[%s1981_s7 + $0x20] sm:$0xff] %v286_v4  ;;  %289 = vst [vmem:[%s1981_s7 + $0x28] sm:$0xff] %v288_v5  ;;  %v292_v7 = vld [vmem:[%s1976_s6 + $0x38] sm:$0xff]  ;;  %v294_v8 = vld [vmem:[%s1976_s6 + $0x80] sm:$0xff] }
  0x13   : > { %291 = vst [vmem:[%s1981_s7 + $0x30] sm:$0xff] %v290_v6  ;;  %293 = vst [vmem:[%s1981_s7 + $0x38] sm:$0xff] %v292_v7  ;;  %v296_v9 = vld [vmem:[%s1976_s6 + $0x88] sm:$0xff]  ;;  %v298_v10 = vld [vmem:[%s1976_s6 + $0x90] sm:$0xff] }
  0x14   : > { %295 = vst [vmem:[%s1981_s7 + $0x40] sm:$0xff] %v294_v8  ;;  %v300_v11 = vld [vmem:[%s1976_s6 + $0x98] sm:$0xff]  ;;  %297 = vst [vmem:[%s1981_s7 + $0x48] sm:$0xff] %v296_v9  ;;  %v302_v12 = vld [vmem:[%s1976_s6 + $0xa0] sm:$0xff] }
  0x15   : > { %299 = vst [vmem:[%s1981_s7 + $0x50] sm:$0xff] %v298_v10  ;;  %301 = vst [vmem:[%s1981_s7 + $0x58] sm:$0xff] %v300_v11  ;;  %v304_v13 = vld [vmem:[%s1976_s6 + $0xa8] sm:$0xff]  ;;  %v306_v14 = vld [vmem:[%s1976_s6 + $0xb0] sm:$0xff] }
  0x16   : > { %303 = vst [vmem:[%s1981_s7 + $0x60] sm:$0xff] %v302_v12  ;;  %305 = vst [vmem:[%s1981_s7 + $0x68] sm:$0xff] %v304_v13  ;;  %v308_v15 = vld [vmem:[%s1976_s6 + $0xb8] sm:$0xff]  ;;  %v310_v16 = vld [vmem:[%s1976_s6 + $0x100] sm:$0xff] }
  0x17   : > { %307 = vst [vmem:[%s1981_s7 + $0x70] sm:$0xff] %v306_v14  ;;  %v312_v17 = vld [vmem:[%s1976_s6 + $0x108] sm:$0xff]  ;;  %309 = vst [vmem:[%s1981_s7 + $0x78] sm:$0xff] %v308_v15  ;;  %v314_v18 = vld [vmem:[%s1976_s6 + $0x110] sm:$0xff] }
  0x18   : > { %311 = vst [vmem:[%s1981_s7 + $0x80] sm:$0xff] %v310_v16  ;;  %313 = vst [vmem:[%s1981_s7 + $0x88] sm:$0xff] %v312_v17  ;;  %v316_v19 = vld [vmem:[%s1976_s6 + $0x118] sm:$0xff]  ;;  %v318_v20 = vld [vmem:[%s1976_s6 + $0x120] sm:$0xff] }
  0x19   : > { %315 = vst [vmem:[%s1981_s7 + $0x90] sm:$0xff] %v314_v18  ;;  %317 = vst [vmem:[%s1981_s7 + $0x98] sm:$0xff] %v316_v19  ;;  %v320_v21 = vld [vmem:[%s1976_s6 + $0x128] sm:$0xff]  ;;  %v322_v22 = vld [vmem:[%s1976_s6 + $0x130] sm:$0xff] }
  0x1a   : > { %319 = vst [vmem:[%s1981_s7 + $0xa0] sm:$0xff] %v318_v20  ;;  %v324_v23 = vld [vmem:[%s1976_s6 + $0x138] sm:$0xff]  ;;  %321 = vst [vmem:[%s1981_s7 + $0xa8] sm:$0xff] %v320_v21  ;;  %v326_v24 = vld [vmem:[%s1976_s6 + $0x180] sm:$0xff] }
  0x1b   : > { %323 = vst [vmem:[%s1981_s7 + $0xb0] sm:$0xff] %v322_v22  ;;  %325 = vst [vmem:[%s1981_s7 + $0xb8] sm:$0xff] %v324_v23  ;;  %v328_v25 = vld [vmem:[%s1976_s6 + $0x188] sm:$0xff]  ;;  %v330_v26 = vld [vmem:[%s1976_s6 + $0x190] sm:$0xff] }
  0x1c   : > { %327 = vst [vmem:[%s1981_s7 + $0xc0] sm:$0xff] %v326_v24  ;;  %329 = vst [vmem:[%s1981_s7 + $0xc8] sm:$0xff] %v328_v25  ;;  %v332_v27 = vld [vmem:[%s1976_s6 + $0x198] sm:$0xff]  ;;  %v334_v28 = vld [vmem:[%s1976_s6 + $0x1a0] sm:$0xff] }
  0x1d   : > { %331 = vst [vmem:[%s1981_s7 + $0xd0] sm:$0xff] %v330_v26  ;;  %v336_v29 = vld [vmem:[%s1976_s6 + $0x1a8] sm:$0xff]  ;;  %333 = vst [vmem:[%s1981_s7 + $0xd8] sm:$0xff] %v332_v27  ;;  %v338_v30 = vld [vmem:[%s1976_s6 + $0x1b0] sm:$0xff] }
  0x1e   : > { %335 = vst [vmem:[%s1981_s7 + $0xe0] sm:$0xff] %v334_v28  ;;  %337 = vst [vmem:[%s1981_s7 + $0xe8] sm:$0xff] %v336_v29  ;;  %v340_v31 = vld [vmem:[%s1976_s6 + $0x1b8] sm:$0xff] }
  0x1f   : > { %339 = vst [vmem:[%s1981_s7 + $0xf0] sm:$0xff] %v338_v30  ;;  %341 = vst [vmem:[%s1981_s7 + $0xf8] sm:$0xff] %v340_v31 }
  0x20 PF: > { %p1707_p5 = scmp.ge.s32.totalorder %s1897_s20, 1  ;;  %p346_p6 = scmp.lt.s32.totalorder %s1897_s20, 3 }
  0x22   : > { %p347_p7 = pnand %p1707_p5, %p346_p6 }
  0x23   : > { %s353_s8 = sand.u32 (!%p347_p7), 1, %s1889_s18   ;;  %s1900_s11 = smov (!%p347_p7), 4  }
  0x24   : > { %350 = sbr.rel (%p347_p7) target bundleno = 984 (0x3d8), region = 74  ;;  %s1708_s9 = sshll.u32 (!%p347_p7), %s353_s8, 8 }
  0x25   : > { %s2107_s10 = scalar_lea.vmem (!%p347_p7), [#allocation4], %s1708_s9  ;;  %s1901_s12 = smov (!%p347_p7), 8  }
  0x26   : > { %s1902_s13 = smov (!%p347_p7), 12   ;;  %s1903_s14 = smov (!%p347_p7), 16  }
  0x27   : > { %s1904_s15 = smov (!%p347_p7), 20   ;;  %s1905_s18 = smov (!%p347_p7), 24  }
  0x28   : > { %s1906_s30 = smov (!%p347_p7), 28   ;;  %s1907_s8 = smov (!%p347_p7), 32  }
  0x29   : > { %vm442_vm0 = vcmask 31744   ;;  %vm444_vm1 = vcmask 25600   ;;  %vm810_vm2 = vcmask 64512   ;;  %v1899_v32 = vmov 0.0   ;;  %v383_v33 = vld [vmem:[%s2107_s10] sm:$0xff]  ;;  %v384_v38 = vld [vmem:[%s2107_s10 + $0x8] sm:$0xff] }
  0x2a   : > { %443 = vst.msk [vmem:[#allocation2] sm:$0xff] %vm442_vm0, %v1899_v32  ;;  %446 = vst.msk [vmem:[#allocation2 + $0x10] sm:$0xff] %vm442_vm0, %v1899_v32  ;;  %v1710_v34 = vld [vmem:[%s2107_s10 + $0x40] sm:$0xff]  ;;  %v1711_v39 = vld [vmem:[%s2107_s10 + $0x48] sm:$0xff]  ;;  %vm910_vm3 = vcmask 1043456   ;;  %vm819_vm4 = vcmask 97280  }
  0x2b   : > { %445 = vst.msk [vmem:[#allocation2 + $0x8] sm:$0x3] %vm444_vm1, %v1899_v32  ;;  %447 = vst.msk [vmem:[#allocation2 + $0x18] sm:$0x3] %vm444_vm1, %v1899_v32  ;;  %v1718_v35 = vld [vmem:[%s2107_s10 + $0x80] sm:$0xff]  ;;  %v400_v36 = vmax.f32 %v383_v33, %v1710_v34  ;;  %v401_v41 = vmax.f32 %v384_v38, %v1711_v39  ;;  %v1719_v42 = vld [vmem:[%s2107_s10 + $0x88] sm:$0xff] }
  0x2c   : > { %448 = vst.msk [vmem:[#allocation2 + $0x20] sm:$0xff] %vm442_vm0, %v1899_v32  ;;  %450 = vst.msk [vmem:[#allocation2 + $0x30] sm:$0xff] %vm442_vm0, %v1899_v32  ;;  %v1726_v37 = vld [vmem:[%s2107_s10 + $0xc0] sm:$0xff]  ;;  %v1727_v43 = vld [vmem:[%s2107_s10 + $0xc8] sm:$0xff]  ;;  %vm828_vm5 = vcmask 130048   ;;  %vm837_vm6 = vcmask 162816  }
  0x2d   : > { %449 = vst.msk [vmem:[#allocation2 + $0x28] sm:$0x3] %vm444_vm1, %v1899_v32  ;;  %451 = vst.msk [vmem:[#allocation2 + $0x38] sm:$0x3] %vm444_vm1, %v1899_v32  ;;  %v426_v40 = vmax.f32 %v1718_v35, %v1726_v37  ;;  %v385_v44 = vld [vmem:[%s2107_s10 + $0x10] sm:$0xff]  ;;  %v427_v45 = vmax.f32 %v1719_v42, %v1727_v43  ;;  %v386_v54 = vld [vmem:[%s2107_s10 + $0x18] sm:$0xff] }
  0x2e   : > { %452 = vst.msk [vmem:[#allocation2 + $0x40] sm:$0xff] %vm442_vm0, %v1899_v32  ;;  %454 = vst.msk [vmem:[#allocation2 + $0x50] sm:$0xff] %vm442_vm0, %v1899_v32  ;;  %v1712_v46 = vld [vmem:[%s2107_s10 + $0x50] sm:$0xff]  ;;  %v1713_v56 = vld [vmem:[%s2107_s10 + $0x58] sm:$0xff]  ;;  %vm846_vm7 = vcmask 195584   ;;  %vm855_vm8 = vcmask 228352  }
  0x2f   : > { %453 = vst.msk [vmem:[#allocation2 + $0x48] sm:$0x3] %vm444_vm1, %v1899_v32  ;;  %455 = vst.msk [vmem:[#allocation2 + $0x58] sm:$0x3] %vm444_vm1, %v1899_v32  ;;  %v1720_v47 = vld [vmem:[%s2107_s10 + $0x90] sm:$0xff]  ;;  %v434_v51 = vmax.f32 %v400_v36, %v426_v40  ;;  %v402_v52 = vmax.f32 %v385_v44, %v1712_v46  ;;  %v435_v55 = vmax.f32 %v401_v41, %v427_v45  ;;  %v1721_v57 = vld [vmem:[%s2107_s10 + $0x98] sm:$0xff] }
  0x30   : > { %456 = vst.msk [vmem:[#allocation2 + $0x60] sm:$0xff] %vm442_vm0, %v1899_v32  ;;  %458 = vst.msk [vmem:[#allocation2 + $0x70] sm:$0xff] %vm442_vm0, %v1899_v32  ;;  %v1728_v48 = vld [vmem:[%s2107_s10 + $0xd0] sm:$0xff]  ;;  %v403_v59 = vmax.f32 %v386_v54, %v1713_v56  ;;  %v1729_v60 = vld [vmem:[%s2107_s10 + $0xd8] sm:$0xff]  ;;  %vm864_vm9 = vcmask 261120   ;;  %vm885_vm10 = vcmask 293888  }
  0x31   : > { %457 = vst.msk [vmem:[#allocation2 + $0x68] sm:$0x3] %vm444_vm1, %v1899_v32  ;;  %459 = vst.msk [vmem:[#allocation2 + $0x78] sm:$0x3] %vm444_vm1, %v1899_v32  ;;  %v428_v53 = vmax.f32 %v1720_v47, %v1728_v48  ;;  %v387_v61 = vld [vmem:[%s2107_s10 + $0x20] sm:$0xff]  ;;  %v429_v63 = vmax.f32 %v1721_v57, %v1729_v60  ;;  %v388_v3 = vld [vmem:[%s2107_s10 + $0x28] sm:$0xff] }
  0x32   : > { %460 = vst.msk [vmem:[#allocation2 + $0x80] sm:$0xff] %vm442_vm0, %v1899_v32  ;;  %462 = vst.msk [vmem:[#allocation2 + $0x90] sm:$0xff] %vm442_vm0, %v1899_v32  ;;  %v481_v49 = vld [vmem:[#allocation2 + $0x1] sm:$0xff]  ;;  %v389_v11 = vld [vmem:[%s2107_s10 + $0x30] sm:$0xff]  ;;  %vm1028_vm11 = vcmask 58368   ;;  %s1908_s9 = smov 48  }
  0x33   : > { %461 = vst.msk [vmem:[#allocation2 + $0x88] sm:$0x3] %vm444_vm1, %v1899_v32  ;;  %463 = vst.msk [vmem:[#allocation2 + $0x98] sm:$0x3] %vm444_vm1, %v1899_v32  ;;  %v489_v50 = vld [vmem:[#allocation2 + $0x2] sm:$0xff]  ;;  %554 = vrot.lane.b32.xlu0 %v481_v49, %s1900_s11  ;;  %v436_v58 = vmax.f32 %v402_v52, %v428_v53  ;;  %v437_v8 = vmax.f32 %v403_v59, %v429_v63  ;;  %v1716_v12 = vld [vmem:[%s2107_s10 + $0x70] sm:$0xff] }
  0x34   : > { %1027 = vst.msk [vmem:[#allocation3] sm:$0xff] %vm810_vm2, %v1899_v32  ;;  %1030 = vst.msk [vmem:[#allocation3 + $0x10] sm:$0xff] %vm810_vm2, %v1899_v32  ;;  %586 = vrot.lane.b32.xlu1 %v489_v50, %s1901_s12  ;;  %v1714_v62 = vld [vmem:[%s2107_s10 + $0x60] sm:$0xff]  ;;  %v1715_v5 = vld [vmem:[%s2107_s10 + $0x68] sm:$0xff]  ;;  %v406_v15 = vmax.f32 %v389_v11, %v1716_v12  ;;  %s1911_s16 = smov 64   ;;  %vm1418_vm12 = vcmask 326656  }
  0x35   : > { %1032 = vst.msk [vmem:[#allocation3 + $0x20] sm:$0xff] %vm810_vm2, %v1899_v32  ;;  %1034 = vst.msk [vmem:[#allocation3 + $0x30] sm:$0xff] %vm810_vm2, %v1899_v32  ;;  %v404_v0 = vmax.f32 %v387_v61, %v1714_v62  ;;  %v1722_v1 = vld [vmem:[%s2107_s10 + $0xa0] sm:$0xff]  ;;  %v1723_v6 = vld [vmem:[%s2107_s10 + $0xa8] sm:$0xff]  ;;  %v405_v9 = vmax.f32 %v388_v3, %v1715_v5  ;;  %vm1427_vm13 = vcmask 392192   ;;  %vm1436_vm14 = vcmask 457728  }
  0x36   : > { %1036 = vst.msk [vmem:[#allocation3 + $0x40] sm:$0xff] %vm810_vm2, %v1899_v32  ;;  %1038 = vst.msk [vmem:[#allocation3 + $0x50] sm:$0xff] %vm810_vm2, %v1899_v32  ;;  %v1730_v2 = vld [vmem:[%s2107_s10 + $0xe0] sm:$0xff]  ;;  %v1731_v7 = vld [vmem:[%s2107_s10 + $0xe8] sm:$0xff]  ;;  %vm1445_vm15 = vcmask 523264   ;;  %p379_p8 = scmp.lt.s32.totalorder %s1700_s21, 1 }
  0x37   : > { %1040 = vst.msk [vmem:[#allocation3 + $0x60] sm:$0xff] %vm810_vm2, %v1899_v32  ;;  %1042 = vst.msk [vmem:[#allocation3 + $0x70] sm:$0xff] %vm810_vm2, %v1899_v32  ;;  %v430_v4 = vmax.f32 %v1722_v1, %v1730_v2  ;;  %v431_v10 = vmax.f32 %v1723_v6, %v1731_v7  ;;  %v1724_v13 = vld [vmem:[%s2107_s10 + $0xb0] sm:$0xff]  ;;  %v390_v17 = vld [vmem:[%s2107_s10 + $0x38] sm:$0xff] }
  0x38   : > { %1044 = vst.msk [vmem:[#allocation3 + $0x80] sm:$0xff] %vm810_vm2, %v1899_v32  ;;  %1046 = vst.msk [vmem:[#allocation3 + $0x90] sm:$0xff] %vm810_vm2, %v1899_v32  ;;  %v1732_v16 = vld [vmem:[%s2107_s10 + $0xf0] sm:$0xff]  ;;  %v1717_v18 = vld [vmem:[%s2107_s10 + $0x78] sm:$0xff]  ;;  %s2599_s21 = smov (!%p379_p8, %s1700_s21), 1 }
  0x39   : > { %465 = vst.msk [vmem:[#allocation2 + $0x11] sm:$0xff] %vm442_vm0, %v434_v51  ;;  %466 = vst.msk [vmem:[#allocation2 + $0x21] sm:$0xff] %vm442_vm0, %v435_v55  ;;  %v438_v14 = vmax.f32 %v404_v0, %v430_v4  ;;  %v439_v19 = vmax.f32 %v405_v9, %v431_v10  ;;  %v432_v20 = vmax.f32 %v1724_v13, %v1732_v16  ;;  %v1725_v22 = vld [vmem:[%s2107_s10 + $0xb8] sm:$0xff]  ;;  %v877_v35 = vld [vmem:[%s2590_s1 + $0x20] sm:$0xf] }
  0x3a   : > { %467 = vst.msk [vmem:[#allocation2 + $0x31] sm:$0xff] %vm442_vm0, %v436_v58  ;;  %468 = vst.msk [vmem:[#allocation2 + $0x41] sm:$0xff] %vm442_vm0, %v437_v8  ;;  %v407_v21 = vmax.f32 %v390_v17, %v1717_v18  ;;  %v1733_v23 = vld [vmem:[%s2107_s10 + $0xf8] sm:$0xff]  ;;  %1786 = vmatprep.subr.msk.mxu0 %vm910_vm3, %v877_v35  ;;  %v875_v39 = vld [vmem:[%s2590_s1 + $0x10] sm:$0xff]  ;;  %s1909_s10 = smov 56  }
  0x3b   : > { %469 = vst.msk [vmem:[#allocation2 + $0x51] sm:$0xff] %vm442_vm0, %v438_v14  ;;  %v433_v24 = vmax.f32 %v1725_v22, %v1733_v23  ;;  %470 = vst.msk [vmem:[#allocation2 + $0x61] sm:$0xff] %vm442_vm0, %v439_v19  ;;  %v440_v27 = vmax.f32 %v406_v15, %v432_v20  ;;  %1787 = vmatpush3.msk.msra.mxu0 %vm910_vm3, %v877_v35  ;;  %v876_v38 = vld [vmem:[%s2590_s1 + $0x18] sm:$0xff]  ;;  %v874_v40 = vld [vmem:[%s2590_s1 + $0x8] sm:$0xff] }
  0x3c   : > { %1788 = vmatprep.subr.mxu0 %v876_v38  ;;  %v873_v42 = vld [vmem:[%s2590_s1] sm:$0xff]  ;;  %v529_v59 = vld [vmem:[#allocation2 + $0x90] sm:$0xff]  ;;  %1033 = vst.msk [vmem:[#allocation3 + $0x28] sm:$0x3] %vm1028_vm11, %v1899_v32  ;;  %1029 = vst.msk [vmem:[#allocation3 + $0x8] sm:$0x3] %vm1028_vm11, %v1899_v32 }
  0x3d   : > { %v441_v28 = vmax.f32 %v407_v21, %v433_v24  ;;  %471 = vst.msk [vmem:[#allocation2 + $0x71] sm:$0xff] %vm442_vm0, %v440_v27  ;;  %1789 = vmatpush3.msra.mxu0 %v876_v38  ;;  %v537_v60 = vld [vmem:[#allocation2 + $0x91] sm:$0xff]  ;;  %v473_v12 = vld [vmem:[#allocation2] sm:$0xff] }
  0x3e   : > { %1790 = vmatprep.subr.mxu0 %v875_v39  ;;  %v545_v63 = vld [vmem:[#allocation2 + $0x92] sm:$0xff]  ;;  %1031 = vst.msk [vmem:[#allocation3 + $0x18] sm:$0x3] %vm1028_vm11, %v1899_v32  ;;  %1035 = vst.msk [vmem:[#allocation3 + $0x38] sm:$0x3] %vm1028_vm11, %v1899_v32 }
  0x3f   : > { %472 = vst.msk [vmem:[#allocation2 + $0x81] sm:$0xff] %vm442_vm0, %v441_v28  ;;  %1791 = vmatpush3.msra.mxu0 %v875_v39 }
  0x40   : > { %v490_v25 = vld [vmem:[#allocation2 + $0x12] sm:$0xff]  ;;  %v2151_v29 = vld [vmem:[#allocation2 + $0x20] sm:$0xff]  ;;  %1792 = vmatprep.subr.mxu0 %v874_v40  ;;  %1037 = vst.msk [vmem:[#allocation3 + $0x48] sm:$0x3] %vm1028_vm11, %v1899_v32  ;;  %1039 = vst.msk [vmem:[#allocation3 + $0x58] sm:$0x3] %vm1028_vm11, %v1899_v32 }
  0x41   : > { %v482_v26 = vld [vmem:[#allocation2 + $0x11] sm:$0xff]  ;;  %588 = vrot.lane.b32.xlu1 %v490_v25, %s1901_s12  ;;  %v483_v31 = vld [vmem:[#allocation2 + $0x21] sm:$0xff]  ;;  %1793 = vmatpush3.msra.mxu0 %v874_v40  ;;  %1041 = vst.msk [vmem:[#allocation3 + $0x68] sm:$0x3] %vm1028_vm11, %v1899_v32  ;;  %1043 = vst.msk [vmem:[#allocation3 + $0x78] sm:$0x3] %vm1028_vm11, %v1899_v32 }
  0x42   : > { %556 = vrot.lane.b32.xlu0 %v482_v26, %s1900_s11  ;;  %v2153_v30 = vld [vmem:[#allocation2 + $0x10] sm:$0xff]  ;;  %v491_v33 = vld [vmem:[#allocation2 + $0x22] sm:$0xff]  ;;  %1794 = vmatprep.subr.mxu0 %v873_v42  ;;  %1045 = vst.msk [vmem:[#allocation3 + $0x88] sm:$0x3] %vm1028_vm11, %v1899_v32  ;;  %1047 = vst.msk [vmem:[#allocation3 + $0x98] sm:$0x3] %vm1028_vm11, %v1899_v32 }
  0x43   : > { %v484_v34 = vld [vmem:[#allocation2 + $0x31] sm:$0xff]  ;;  %v2190_v41 = vld [vmem:[#allocation2 + $0x40] sm:$0xff]  ;;  %1795 = vmatpush3.msra.mxu0 %v873_v42 }
  0x44   : > { %v2173_v36 = vld [vmem:[#allocation2 + $0x30] sm:$0xff]  ;;  %v508_v43 = vld [vmem:[#allocation2 + $0x41] sm:$0xff] }
  0x45   : > { %620 = vrot.lane.b32.xlu1 %v2151_v29, %s1902_s13  ;;  %v492_v37 = vld [vmem:[#allocation2 + $0x32] sm:$0xff]  ;;  %v493_v44 = vld [vmem:[#allocation2 + $0x42] sm:$0xff] }
  0x46   : > { %618 = vrot.lane.b32.xlu0 %v2153_v30, %s1902_s13  ;;  %v486_v45 = vld [vmem:[#allocation2 + $0x51] sm:$0xff]  ;;  %v2217_v48 = vld [vmem:[#allocation2 + $0x60] sm:$0xff] }
  0x47   : > { %v2209_v46 = vld [vmem:[#allocation2 + $0x50] sm:$0xff]  ;;  %v510_v49 = vld [vmem:[#allocation2 + $0x61] sm:$0xff] }
  0x48   : > { %v494_v47 = vld [vmem:[#allocation2 + $0x52] sm:$0xff]  ;;  %v495_v50 = vld [vmem:[#allocation2 + $0x62] sm:$0xff] }
  0x49   : > { %558 = vrot.lane.b32.xlu1 %v483_v31, %s1900_s11  ;;  %v488_v51 = vld [vmem:[#allocation2 + $0x71] sm:$0xff]  ;;  %v504_v54 = vld [vmem:[#allocation2 + $0x80] sm:$0xff] }
  0x4a   : > { %650 = vrot.lane.b32.xlu0 %v482_v26, %s1903_s14  ;;  %v2233_v52 = vld [vmem:[#allocation2 + $0x70] sm:$0xff]  ;;  %v512_v55 = vld [vmem:[#allocation2 + $0x81] sm:$0xff] }
  0x4b   : > { %v496_v53 = vld [vmem:[#allocation2 + $0x72] sm:$0xff]  ;;  %v520_v56 = vld [vmem:[#allocation2 + $0x82] sm:$0xff] }
  0x4d   : > { %682 = vrot.lane.b32.xlu1 %v490_v25, %s1904_s15 }
  0x4e   : > { %652 = vrot.lane.b32.xlu0 %v483_v31, %s1903_s14 }
  0x51   : > { %590 = vrot.lane.b32.xlu1 %v491_v33, %s1901_s12 }
  0x52   : > { %560 = vrot.lane.b32.xlu0 %v484_v34, %s1900_s11 }
  0x55   : > { %714 = vrot.lane.b32.xlu1 %v2151_v29, %s1905_s18 }
  0x56   : > { %684 = vrot.lane.b32.xlu0 %v491_v33, %s1904_s15 }
  0x59   : > { %622 = vrot.lane.b32.xlu1 %v2173_v36, %s1902_s13 }
  0x5a   : > { %592 = vrot.lane.b32.xlu0 %v492_v37, %s1901_s12 }
  0x5d   : > { %746 = vrot.lane.b32.xlu1 %v483_v31, %s1906_s30 }
  0x5e   : > { %716 = vrot.lane.b32.xlu0 %v2173_v36, %s1905_s18 }
  0x61   : > { %654 = vrot.lane.b32.xlu1 %v484_v34, %s1903_s14 }
  0x62   : > { %624 = vrot.lane.b32.xlu0 %v2190_v41, %s1902_s13 }
  0x65   : > { %778 = vrot.lane.b32.xlu1 %v491_v33, %s1907_s8 }
  0x66   : > { %748 = vrot.lane.b32.xlu0 %v484_v34, %s1906_s30 }
  0x69   : > { %656 = vrot.lane.b32.xlu1 %v508_v43, %s1903_s14 }
  0x6a   : > { %562 = vrot.lane.b32.xlu0 %v508_v43, %s1900_s11 }
  0x6d   : > { %780 = vrot.lane.b32.xlu1 %v492_v37, %s1907_s8 }
  0x6e   : > { %686 = vrot.lane.b32.xlu0 %v492_v37, %s1904_s15 }
  0x71   : > { %594 = vrot.lane.b32.xlu1 %v493_v44, %s1901_s12 }
  0x72   : > { %564 = vrot.lane.b32.xlu0 %v486_v45, %s1900_s11 }
  0x75   : > { %718 = vrot.lane.b32.xlu1 %v2190_v41, %s1905_s18 }
  0x76   : > { %688 = vrot.lane.b32.xlu0 %v493_v44, %s1904_s15 }
  0x79   : > { %626 = vrot.lane.b32.xlu1 %v2209_v46, %s1902_s13 }
  0x7a   : > { %596 = vrot.lane.b32.xlu0 %v494_v47, %s1901_s12 }
  0x7d   : > { %750 = vrot.lane.b32.xlu1 %v508_v43, %s1906_s30 }
  0x7e   : > { %720 = vrot.lane.b32.xlu0 %v2209_v46, %s1905_s18 }
  0x81   : > { %658 = vrot.lane.b32.xlu1 %v486_v45, %s1903_s14 }
  0x82   : > { %628 = vrot.lane.b32.xlu0 %v2217_v48, %s1902_s13 }
  0x85   : > { %782 = vrot.lane.b32.xlu1 %v493_v44, %s1907_s8 }
  0x86   : > { %752 = vrot.lane.b32.xlu0 %v486_v45, %s1906_s30 }
  0x89   : > { %660 = vrot.lane.b32.xlu1 %v510_v49, %s1903_s14 }
  0x8a   : > { %566 = vrot.lane.b32.xlu0 %v510_v49, %s1900_s11 }
  0x8d   : > { %784 = vrot.lane.b32.xlu1 %v494_v47, %s1907_s8 }
  0x8e   : > { %690 = vrot.lane.b32.xlu0 %v494_v47, %s1904_s15 }
  0x91   : > { %598 = vrot.lane.b32.xlu1 %v495_v50, %s1901_s12 }
  0x92   : > { %568 = vrot.lane.b32.xlu0 %v488_v51, %s1900_s11 }
  0x95   : > { %722 = vrot.lane.b32.xlu1 %v2217_v48, %s1905_s18 }
  0x96   : > { %692 = vrot.lane.b32.xlu0 %v495_v50, %s1904_s15 }
  0x99   : > { %630 = vrot.lane.b32.xlu1 %v2233_v52, %s1902_s13 }
  0x9a   : > { %600 = vrot.lane.b32.xlu0 %v496_v53, %s1901_s12 }
  0x9d   : > { %754 = vrot.lane.b32.xlu1 %v510_v49, %s1906_s30 }
  0x9e   : > { %724 = vrot.lane.b32.xlu0 %v2233_v52, %s1905_s18 }
  0xa1   : > { %662 = vrot.lane.b32.xlu1 %v488_v51, %s1903_s14 }
  0xa2   : > { %632 = vrot.lane.b32.xlu0 %v504_v54, %s1902_s13 }
  0xa5   : > { %786 = vrot.lane.b32.xlu1 %v495_v50, %s1907_s8  ;;  %v555_v57 = vpop.permute.xlu0 %554 }
  0xa6   : > { %756 = vrot.lane.b32.xlu0 %v488_v51, %s1906_s30  ;;  %v587_v58 = vpop.permute.xlu1 %586  ;;  %v802_v13 = vsel %vm442_vm0, %v473_v12, %v555_v57 }
  0xa7   : > { %v811_v16 = vsel %vm810_vm2, %v802_v13, %v587_v58 }
  0xa9   : > { %694 = vrot.lane.b32.xlu1 %v496_v53, %s1904_s15 }
  0xaa   : > { %664 = vrot.lane.b32.xlu0 %v512_v55, %s1903_s14 }
  0xad   : > { %696 = vrot.lane.b32.xlu1 %v520_v56, %s1904_s15  ;;  %s1910_s15 = smov 40  }
  0xae   : > { %788 = vrot.lane.b32.xlu0 %v496_v53, %s1907_s8 }
  0xb1   : > { %728 = vrot.lane.b32.xlu1 %v529_v59, %s1905_s18 }
  0xb2   : > { %726 = vrot.lane.b32.xlu0 %v504_v54, %s1905_s18 }
  0xb3   : > { %v589_v61 = vpop.permute.xlu1 %588 }
  0xb4   : > { %v557_v62 = vpop.permute.xlu0 %556 }
  0xb5   : > { %760 = vrot.lane.b32.xlu1 %v537_v60, %s1906_s30  ;;  %v803_v23 = vsel %vm442_vm0, %v2153_v30, %v557_v62 }
  0xb6   : > { %758 = vrot.lane.b32.xlu0 %v512_v55, %s1906_s30  ;;  %v812_v28 = vsel %vm810_vm2, %v803_v23, %v589_v61 }
  0xb7   : > { %v621_v0 = vpop.permute.xlu1 %620 }
  0xb8   : > { %v619_v1 = vpop.permute.xlu0 %618  ;;  %v821_v31 = vsel %vm819_vm4, %v812_v28, %v621_v0 }
  0xb9   : > { %792 = vrot.lane.b32.xlu1 %v545_v63, %s1907_s8  ;;  %v820_v17 = vsel %vm819_vm4, %v811_v16, %v619_v1 }
  0xba   : > { %790 = vrot.lane.b32.xlu0 %v520_v56, %s1907_s8 }
  0xbb   : > { %v559_v2 = vpop.permute.xlu1 %558 }
  0xbc   : > { %v651_v3 = vpop.permute.xlu0 %650  ;;  %v804_v54 = vsel %vm442_vm0, %v2151_v29, %v559_v2 }
  0xbd   : > { %v829_v20 = vsel %vm828_vm5, %v820_v17, %v651_v3 }
  0xbf   : > { %v683_v4 = vpop.permute.xlu1 %682 }
  0xc0   : > { %v653_v5 = vpop.permute.xlu0 %652  ;;  %v838_v21 = vsel %vm837_vm6, %v829_v20, %v683_v4 }
  0xc1   : > { %v830_v35 = vsel %vm828_vm5, %v821_v31, %v653_v5 }
  0xc3   : > { %v591_v6 = vpop.permute.xlu1 %590 }
  0xc4   : > { %v561_v7 = vpop.permute.xlu0 %560  ;;  %v813_v55 = vsel %vm810_vm2, %v804_v54, %v591_v6  ;;  %v1065_v54 = vld [vmem:[#allocation3 + $0x1] sm:$0xff] }
  0xc5   : > { %v805_v29 = vsel %vm442_vm0, %v2173_v36, %v561_v7  ;;  %1138 = vrot.lane.b32.xlu0 %v1065_v54, %s1901_s12 }
  0xc7   : > { %v715_v8 = vpop.permute.xlu1 %714 }
  0xc8   : > { %v685_v9 = vpop.permute.xlu0 %684  ;;  %v847_v22 = vsel %vm846_vm7, %v838_v21, %v715_v8 }
  0xc9   : > { %v839_v37 = vsel %vm837_vm6, %v830_v35, %v685_v9 }
  0xcb   : > { %v623_v10 = vpop.permute.xlu1 %622 }
  0xcc   : > { %v593_v11 = vpop.permute.xlu0 %592  ;;  %v822_v56 = vsel %vm819_vm4, %v813_v55, %v623_v10 }
  0xcd   : > { %v814_v2 = vsel %vm810_vm2, %v805_v29, %v593_v11 }
  0xcf   : > { %v747_v14 = vpop.permute.xlu1 %746 }
  0xd0   : > { %v717_v15 = vpop.permute.xlu0 %716  ;;  %v856_v24 = vsel %vm855_vm8, %v847_v22, %v747_v14 }
  0xd1   : > { %v848_v30 = vsel %vm846_vm7, %v839_v37, %v717_v15 }
  0xd3   : > { %v655_v18 = vpop.permute.xlu1 %654 }
  0xd4   : > { %v625_v19 = vpop.permute.xlu0 %624  ;;  %v831_v59 = vsel %vm828_vm5, %v822_v56, %v655_v18 }
  0xd5   : > { %v823_v3 = vsel %vm819_vm4, %v814_v2, %v625_v19 }
  0xd7   : > { %v779_v25 = vpop.permute.xlu1 %778 }
  0xd8   : > { %v749_v26 = vpop.permute.xlu0 %748  ;;  %v865_v27 = vsel %vm864_vm9, %v856_v24, %v779_v25 }
  0xd9   : > { %1796 = vmatprep.mubr.msk.f32.mxu0 %vm885_vm10, %v865_v27  ;;  %v857_v38 = vsel %vm855_vm8, %v848_v30, %v749_v26 }
  0xdb   : > { %v657_v33 = vpop.permute.xlu1 %656 }
  0xdc   : > { %v563_v34 = vpop.permute.xlu0 %562  ;;  %v832_v6 = vsel %vm828_vm5, %v823_v3, %v657_v33 }
  0xdd   : > { %v806_v20 = vsel %vm442_vm0, %v2190_v41, %v563_v34 }
  0xdf   : > { %v781_v39 = vpop.permute.xlu1 %780 }
  0xe0   : > { %v687_v40 = vpop.permute.xlu0 %686  ;;  %v866_v42 = vsel %vm864_vm9, %v857_v38, %v781_v39 }
  0xe1   : > { %1797 = vmatmul.mubr.msk.f32.vlgmr.msra.gmra.mxu0 %vm885_vm10, %v866_v42  ;;  %v840_v60 = vsel %vm837_vm6, %v831_v59, %v687_v40 }
  0xe3   : > { %v595_v43 = vpop.permute.xlu1 %594 }
  0xe4   : > { %v565_v44 = vpop.permute.xlu0 %564  ;;  %v815_v21 = vsel %vm810_vm2, %v806_v20, %v595_v43 }
  0xe5   : > { %v807_v41 = vsel %vm442_vm0, %v2209_v46, %v565_v44 }
  0xe7   : > { %v719_v45 = vpop.permute.xlu1 %718 }
  0xe8   : > { %v689_v47 = vpop.permute.xlu0 %688  ;;  %v849_v61 = vsel %vm846_vm7, %v840_v60, %v719_v45  ;;  %v1121_v60 = vld [vmem:[#allocation3 + $0x91] sm:$0xff] }
  0xe9   : > { %v841_v8 = vsel %vm837_vm6, %v832_v6, %v689_v47 }
  0xeb   : > { %v627_v49 = vpop.permute.xlu1 %626 }
  0xec   : > { %v597_v50 = vpop.permute.xlu0 %596  ;;  %v824_v22 = vsel %vm819_vm4, %v815_v21, %v627_v49 }
  0xed   : > { %v816_v34 = vsel %vm810_vm2, %v807_v41, %v597_v50  ;;  %v1458_v41 = vld [vmem:[%s2592_s3 + $0x20] sm:$0xff] }
  0xef   : > { %v751_v51 = vpop.permute.xlu1 %750 }
  0xf0   : > { %v721_v53 = vpop.permute.xlu0 %720  ;;  %v858_v62 = vsel %vm855_vm8, %v849_v61, %v751_v51  ;;  %v1073_v61 = vld [vmem:[#allocation3 + $0x2] sm:$0xff] }
  0xf1   : > { %v850_v9 = vsel %vm846_vm7, %v841_v8, %v721_v53  ;;  %v1113_v53 = vld [vmem:[#allocation3 + $0x90] sm:$0xff]  ;;  %1170 = vrot.lane.b32.xlu0 %v1073_v61, %s1903_s14  ;;  %v2351_v8 = vld [vmem:[%s2591_s2] ss:$0 sm:$0xff] }
  0xf2   : > { %1312 = vrot.lane.b32.xlu1 %v1113_v53, %s1908_s9 }
  0xf3   : > { %v659_v57 = vpop.permute.xlu1 %658 }
  0xf4   : > { %v629_v58 = vpop.permute.xlu0 %628  ;;  %v833_v25 = vsel %vm828_vm5, %v824_v22, %v659_v57 }
  0xf5   : > { %v825_v37 = vsel %vm819_vm4, %v816_v34, %v629_v58 }
  0xf6   : > { %1344 = vrot.lane.b32.xlu1 %v1121_v60, %s1909_s10 }
  0xf7   : > { %v783_v63 = vpop.permute.xlu1 %782 }
  0xf8   : > { %v753_v0 = vpop.permute.xlu0 %752  ;;  %v867_v1 = vsel %vm864_vm9, %v858_v62, %v783_v63 }
  0xf9   : > { %1799 = vmatprep.mubr.msk.f32.mxu0 %vm885_vm10, %v867_v1  ;;  %v859_v10 = vsel %vm855_vm8, %v850_v9, %v753_v0 }
  0xfb   : > { %v661_v4 = vpop.permute.xlu1 %660 }
  0xfc   : > { %v567_v5 = vpop.permute.xlu0 %566  ;;  %v834_v39 = vsel %vm828_vm5, %v825_v37, %v661_v4  ;;  %v1457_v37 = vld [vmem:[%s2592_s3 + $0x18] sm:$0xff] }
  0xfd   : > { %v808_v50 = vsel %vm442_vm0, %v2217_v48, %v567_v5 }
  0xff   : > { %v785_v12 = vpop.permute.xlu1 %784 }
 0x100   : > { %v691_v13 = vpop.permute.xlu0 %690  ;;  %v868_v36 = vsel %vm864_vm9, %v859_v10, %v785_v12 }
 0x101   : > { %1800 = vmatmul.mubr.msk.f32.gmra.mxu0 %vm885_vm10, %v868_v36  ;;  %v842_v26 = vsel %vm837_vm6, %v833_v25, %v691_v13 }
 0x103   : > { %v599_v7 = vpop.permute.xlu1 %598 }
 0x104   : > { %v569_v11 = vpop.permute.xlu0 %568  ;;  %v817_v32 = vsel %vm810_vm2, %v808_v50, %v599_v7 }
 0x105   : > { %v809_v51 = vsel %vm442_vm0, %v2233_v52, %v569_v11  ;;  %vm1470_vm0 = vcmask 588800  }
 0x107   : > { %v723_v14 = vpop.permute.xlu1 %722 }
 0x108   : > { %v693_v15 = vpop.permute.xlu0 %692  ;;  %v851_v27 = vsel %vm846_vm7, %v842_v26, %v723_v14  ;;  %v1462_v26 = vld [vmem:[%s2592_s3 + $0x40] sm:$0xff] }
 0x109   : > { %v843_v40 = vsel %vm837_vm6, %v834_v39, %v693_v15  ;;  %1808 = vmatprep.subr.mxu1 %v1462_v26  ;;  %v1455_v39 = vld [vmem:[%s2592_s3 + $0x8] sm:$0xff] }
 0x10a   : > { %1809 = vmatpush3.msra.mxu1 %v1462_v26 }
 0x10b   : > { %v631_v16 = vpop.permute.xlu1 %630 }
 0x10c   : > { %v601_v17 = vpop.permute.xlu0 %600  ;;  %v826_v56 = vsel %vm819_vm4, %v817_v32, %v631_v16 }
 0x10d   : > { %v818_v55 = vsel %vm810_vm2, %v809_v51, %v601_v17 }
 0x10f   : > { %v755_v18 = vpop.permute.xlu1 %754 }
 0x110   : > { %v725_v19 = vpop.permute.xlu0 %724  ;;  %v860_v28 = vsel %vm855_vm8, %v851_v27, %v755_v18 }
 0x111   : > { %v852_v42 = vsel %vm846_vm7, %v843_v40, %v725_v19 }
 0x113   : > { %v663_v23 = vpop.permute.xlu1 %662 }
 0x114   : > { %v633_v24 = vpop.permute.xlu0 %632  ;;  %v835_v59 = vsel %vm828_vm5, %v826_v56, %v663_v23 }
 0x115   : > { %v827_v57 = vsel %vm819_vm4, %v818_v55, %v633_v24 }
 0x117   : > { %v787_v31 = vpop.permute.xlu1 %786 }
 0x118   : > { %v757_v33 = vpop.permute.xlu0 %756  ;;  %v869_v35 = vsel %vm864_vm9, %v860_v28, %v787_v31  ;;  %v1461_v28 = vld [vmem:[%s2592_s3 + $0x38] sm:$0xff]  ;;  %v1460_v31 = vld [vmem:[%s2592_s3 + $0x30] sm:$0xff] }
 0x119   : > { %1802 = vmatprep.mubr.msk.f32.mxu0 %vm885_vm10, %v869_v35  ;;  %v861_v46 = vsel %vm855_vm8, %v852_v42, %v757_v33  ;;  %1810 = vmatprep.subr.mxu1 %v1461_v28  ;;  %v1459_v35 = vld [vmem:[%s2592_s3 + $0x28] sm:$0xff] }
 0x11a   : > { %1811 = vmatpush3.msra.mxu1 %v1461_v28 }
 0x11b   : > { %v695_v30 = vpop.permute.xlu1 %694  ;;  %1812 = vmatprep.subr.mxu1 %v1460_v31 }
 0x11c   : > { %v665_v38 = vpop.permute.xlu0 %664  ;;  %v844_v62 = vsel %vm837_vm6, %v835_v59, %v695_v30  ;;  %1813 = vmatpush3.msra.mxu1 %v1460_v31 }
 0x11d   : > { %v836_v52 = vsel %vm828_vm5, %v827_v57, %v665_v38  ;;  %1814 = vmatprep.subr.mxu1 %v1459_v35  ;;  %v1456_v38 = vld [vmem:[%s2592_s3 + $0x10] sm:$0xff] }
 0x11e   : > { %1815 = vmatpush3.msra.mxu1 %v1459_v35 }
 0x11f   : > { %v697_v43 = vpop.permute.xlu1 %696  ;;  %1816 = vmatprep.subr.mxu1 %v1458_v41 }
 0x120   : > { %v789_v44 = vpop.permute.xlu0 %788  ;;  %v845_v63 = vsel %vm837_vm6, %v836_v52, %v697_v43  ;;  %1817 = vmatpush3.msra.mxu1 %v1458_v41  ;;  %v1454_v43 = vld [vmem:[%s2592_s3] sm:$0xff] }
 0x121   : > { %v870_v45 = vsel %vm864_vm9, %v861_v46, %v789_v44  ;;  %1818 = vmatprep.subr.mxu1 %v1457_v37 }
 0x122   : > { %1803 = vmatmul.mubr.msk.f32.gmra.mxu0 %vm885_vm10, %v870_v45  ;;  %1819 = vmatpush3.msra.mxu1 %v1457_v37 }
 0x123   : > { %v729_v47 = vpop.permute.xlu1 %728  ;;  %1820 = vmatprep.subr.mxu1 %v1456_v38 }
 0x124   : > { %v727_v49 = vpop.permute.xlu0 %726  ;;  %v854_v0 = vsel %vm846_vm7, %v845_v63, %v729_v47  ;;  %1821 = vmatpush3.msra.mxu1 %v1456_v38 }
 0x125   : > { %v853_v1 = vsel %vm846_vm7, %v844_v62, %v727_v49  ;;  %1822 = vmatprep.subr.mxu1 %v1455_v39 }
 0x126   : > { %1823 = vmatpush3.msra.mxu1 %v1455_v39 }
 0x127   : > { %v761_v58 = vpop.permute.xlu1 %760  ;;  %1824 = vmatprep.subr.mxu1 %v1454_v43 }
 0x128   : > { %v759_v48 = vpop.permute.xlu0 %758  ;;  %v863_v29 = vsel %vm855_vm8, %v854_v0, %v761_v58  ;;  %1825 = vmatpush3.msra.mxu1 %v1454_v43 }
 0x129   : > { %v862_v2 = vsel %vm855_vm8, %v853_v1, %v759_v48 }
 0x12b   : > { %v793_v3 = vpop.permute.xlu1 %792 }
 0x12c   : > { %v791_v4 = vpop.permute.xlu0 %790  ;;  %v872_v5 = vsel %vm864_vm9, %v863_v29, %v793_v3 }
 0x12d   : > { %v871_v6 = vsel %vm864_vm9, %v862_v2, %v791_v4  ;;  %v1129_v4 = vld [vmem:[#allocation3 + $0x92] sm:$0xff] }
 0x12e   : > { %1805 = vmatprep.mubr.msk.f32.mxu0 %vm885_vm10, %v871_v6 }
 0x12f   : > { %1806 = vmatmul.mubr.msk.f32.gmra.mxu0 %vm885_vm10, %v872_v5 }
 0x137   : > { %v1139_v3 = vpop.permute.xlu0 %1138 }
 0x163   : > { %v1171_v6 = vpop.permute.xlu0 %1170 }
 0x164   : > { %v2467_v63 = vpop.permute.xlu1 %1312 }
 0x168   : > { %v2476_v29 = vpop.permute.xlu1 %1344 }
 0x1a1   : > { %v1798_v9 = vpop.f32.mrf.mxu0 }
 0x1a2   : > { %v986_v10 = vadd.f32 %v1798_v9, %v2351_v8 }
 0x1a3   : > { %v980_v12 = vpop.f32.mrf.mxu0 }
 0x1a4   : > { %v1020_v13 = vmax.f32 %v986_v10, 0.0  ;;  %v981_v36 = vadd.f32 %v2351_v8, %v980_v12 }
 0x1a6   : > { %1050 = vst.msk [vmem:[#allocation3 + $0x21] sm:$0xff] %vm810_vm2, %v1020_v13  ;;  %v1019_v7 = vmax.f32 %v981_v36, 0.0 }
 0x1a8   : > { %1049 = vst.msk [vmem:[#allocation3 + $0x11] sm:$0xff] %vm810_vm2, %v1019_v7 }
 0x1ad   : > { %v1090_v11 = vld [vmem:[#allocation3 + $0x21] sm:$0xff] }
 0x1ae   : > { %v2357_v14 = vld [vmem:[#allocation3 + $0x20] sm:$0xff]  ;;  %1236 = vrot.lane.b32.xlu0 %v1090_v11, %s1907_s8 }
 0x1af   : > { %1204 = vrot.lane.b32.xlu1 %v2357_v14, %s1905_s18  ;;  %v1098_v15 = vld [vmem:[#allocation3 + $0x22] sm:$0xff]  ;;  %v2364_v16 = vld [vmem:[#allocation3 + $0x10] sm:$0xff] }
 0x1b0   : > { %v1089_v17 = vld [vmem:[#allocation3 + $0x11] sm:$0xff] }
 0x1b1   : > { %v1074_v24 = vld [vmem:[#allocation3 + $0x12] sm:$0xff] }
 0x1b2   : > { %1268 = vrot.lane.b32.xlu0 %v1098_v15, %s1910_s15 }
 0x1b3   : > { %1142 = vrot.lane.b32.xlu1 %v1090_v11, %s1901_s12 }
 0x1b6   : > { %1202 = vrot.lane.b32.xlu0 %v2364_v16, %s1905_s18 }
 0x1b7   : > { %1174 = vrot.lane.b32.xlu1 %v1098_v15, %s1903_s14 }
 0x1ba   : > { %1234 = vrot.lane.b32.xlu0 %v1089_v17, %s1907_s8 }
 0x1bb   : > { %1298 = vrot.lane.b32.xlu1 %v2357_v14, %s1908_s9 }
 0x1bf   : > { %1330 = vrot.lane.b32.xlu1 %v1090_v11, %s1909_s10  ;;  %v1057_v11 = vld [vmem:[#allocation3] sm:$0xff] }
 0x1c1   : > { %v1801_v18 = vpop.f32.mrf.mxu0 }
 0x1c2   : > { %v996_v19 = vadd.f32 %v1801_v18, %v2351_v8  ;;  %v1386_v18 = vsel %vm810_vm2, %v1057_v11, %v1139_v3 }
 0x1c3   : > { %1362 = vrot.lane.b32.xlu1 %v1098_v15, %s1911_s16  ;;  %v990_v20 = vpop.f32.mrf.mxu0 }
 0x1c4   : > { %v1022_v21 = vmax.f32 %v996_v19, 0.0  ;;  %v991_v22 = vadd.f32 %v2351_v8, %v990_v20  ;;  %v1394_v19 = vsel %vm828_vm5, %v1386_v18, %v1171_v6 }
 0x1c6   : > { %1052 = vst.msk [vmem:[#allocation3 + $0x41] sm:$0xff] %vm810_vm2, %v1022_v21  ;;  %v1021_v23 = vmax.f32 %v991_v22, 0.0 }
 0x1c7   : > { %1140 = vrot.lane.b32.xlu1 %v1089_v17, %s1901_s12 }
 0x1c8   : > { %1051 = vst.msk [vmem:[#allocation3 + $0x31] sm:$0xff] %vm810_vm2, %v1021_v23 }
 0x1cb   : > { %1172 = vrot.lane.b32.xlu1 %v1074_v24, %s1903_s14 }
 0x1cd   : > { %v2380_v25 = vld [vmem:[#allocation3 + $0x40] sm:$0xff] }
 0x1ce   : > { %1208 = vrot.lane.b32.xlu0 %v2380_v25, %s1905_s18  ;;  %v1069_v27 = vld [vmem:[#allocation3 + $0x41] sm:$0xff] }
 0x1cf   : > { %1266 = vrot.lane.b32.xlu1 %v1074_v24, %s1910_s15  ;;  %v1100_v33 = vld [vmem:[#allocation3 + $0x42] sm:$0xff]  ;;  %v1068_v34 = vld [vmem:[#allocation3 + $0x31] sm:$0xff] }
 0x1d0   : > { %v1076_v30 = vld [vmem:[#allocation3 + $0x32] sm:$0xff] }
 0x1d1   : > { %v2418_v42 = vld [vmem:[#allocation3 + $0x30] sm:$0xff] }
 0x1d2   : > { %1146 = vrot.lane.b32.xlu0 %v1069_v27, %s1901_s12 }
 0x1d3   : > { %1240 = vrot.lane.b32.xlu1 %v1069_v27, %s1907_s8 }
 0x1d6   : > { %1272 = vrot.lane.b32.xlu0 %v1100_v33, %s1910_s15 }
 0x1d7   : > { %1178 = vrot.lane.b32.xlu1 %v1100_v33, %s1903_s14 }
 0x1da   : > { %1144 = vrot.lane.b32.xlu0 %v1068_v34, %s1901_s12 }
 0x1db   : > { %1302 = vrot.lane.b32.xlu1 %v2380_v25, %s1908_s9 }
 0x1de   : > { %1176 = vrot.lane.b32.xlu0 %v1076_v30, %s1903_s14 }
 0x1df   : > { %1334 = vrot.lane.b32.xlu1 %v1069_v27, %s1909_s10 }
 0x1e2   : > { %v1804_v40 = vpop.f32.mrf.mxu0  ;;  %1300 = vrot.lane.b32.xlu0 %v2418_v42, %s1908_s9 }
 0x1e3   : > { %v1006_v46 = vadd.f32 %v1804_v40, %v2351_v8  ;;  %1366 = vrot.lane.b32.xlu1 %v1100_v33, %s1911_s16 }
 0x1e4   : > { %v1000_v44 = vpop.f32.mrf.mxu0 }
 0x1e5   : > { %v1024_v45 = vmax.f32 %v1006_v46, 0.0  ;;  %v1001_v47 = vadd.f32 %v2351_v8, %v1000_v44 }
 0x1e6   : > { %1332 = vrot.lane.b32.xlu0 %v1068_v34, %s1909_s10 }
 0x1e7   : > { %1054 = vst.msk [vmem:[#allocation3 + $0x61] sm:$0xff] %vm810_vm2, %v1024_v45  ;;  %v1023_v49 = vmax.f32 %v1001_v47, 0.0  ;;  %1206 = vrot.lane.b32.xlu1 %v2418_v42, %s1905_s18 }
 0x1e9   : > { %1053 = vst.msk [vmem:[#allocation3 + $0x51] sm:$0xff] %vm810_vm2, %v1023_v49 }
 0x1ea   : > { %1270 = vrot.lane.b32.xlu0 %v1076_v30, %s1910_s15 }
 0x1eb   : > { %1238 = vrot.lane.b32.xlu1 %v1068_v34, %s1907_s8 }
 0x1ee   : > { %v2435_v50 = vld [vmem:[#allocation3 + $0x60] sm:$0xff] }
 0x1ef   : > { %v1807_v51 = vpop.f32.mrf.mxu0  ;;  %1212 = vrot.lane.b32.xlu0 %v2435_v50, %s1905_s18  ;;  %1364 = vrot.lane.b32.xlu1 %v1076_v30, %s1911_s16  ;;  %v1071_v56 = vld [vmem:[#allocation3 + $0x61] sm:$0xff] }
 0x1f0   : > { %v1016_v53 = vadd.f32 %v1807_v51, %v2351_v8  ;;  %v1102_v58 = vld [vmem:[#allocation3 + $0x62] sm:$0xff]  ;;  %v1070_v48 = vld [vmem:[#allocation3 + $0x51] sm:$0xff] }
 0x1f1   : > { %v1010_v54 = vpop.f32.mrf.mxu0  ;;  %v1078_v59 = vld [vmem:[#allocation3 + $0x52] sm:$0xff] }
 0x1f2   : > { %v1026_v32 = vmax.f32 %v1016_v53, 0.0  ;;  %v1011_v55 = vadd.f32 %v2351_v8, %v1010_v54  ;;  %v2453_v52 = vld [vmem:[#allocation3 + $0x50] sm:$0xff] }
 0x1f3   : > { %1150 = vrot.lane.b32.xlu0 %v1071_v56, %s1901_s12  ;;  %1244 = vrot.lane.b32.xlu1 %v1071_v56, %s1907_s8 }
 0x1f4   : > { %1056 = vst.msk [vmem:[#allocation3 + $0x81] sm:$0xff] %vm810_vm2, %v1026_v32  ;;  %v1025_v57 = vmax.f32 %v1011_v55, 0.0 }
 0x1f6   : > { %1055 = vst.msk [vmem:[#allocation3 + $0x71] sm:$0xff] %vm810_vm2, %v1025_v57 }
 0x1f7   : > { %1276 = vrot.lane.b32.xlu0 %v1102_v58, %s1910_s15  ;;  %1182 = vrot.lane.b32.xlu1 %v1102_v58, %s1903_s14 }
 0x1fb   : > { %1148 = vrot.lane.b32.xlu0 %v1070_v48, %s1901_s12  ;;  %1306 = vrot.lane.b32.xlu1 %v2435_v50, %s1908_s9  ;;  %v1088_v60 = vld [vmem:[#allocation3 + $0x80] sm:$0xff] }
 0x1fc   : > { %v1096_v61 = vld [vmem:[#allocation3 + $0x81] sm:$0xff] }
 0x1fd   : > { %v1104_v62 = vld [vmem:[#allocation3 + $0x82] sm:$0xff]  ;;  %v2469_v0 = vld [vmem:[#allocation3 + $0x70] sm:$0xff] }
 0x1fe   : > { %v1095_v1 = vld [vmem:[#allocation3 + $0x71] sm:$0xff] }
 0x1ff   : > { %1180 = vrot.lane.b32.xlu0 %v1078_v59, %s1903_s14  ;;  %1338 = vrot.lane.b32.xlu1 %v1071_v56, %s1909_s10  ;;  %v1103_v2 = vld [vmem:[#allocation3 + $0x72] sm:$0xff] }
 0x203   : > { %1304 = vrot.lane.b32.xlu0 %v2453_v52, %s1908_s9  ;;  %1370 = vrot.lane.b32.xlu1 %v1102_v58, %s1911_s16 }
 0x207   : > { %1336 = vrot.lane.b32.xlu0 %v1070_v48, %s1909_s10  ;;  %1210 = vrot.lane.b32.xlu1 %v2453_v52, %s1905_s18 }
 0x20b   : > { %1274 = vrot.lane.b32.xlu0 %v1078_v59, %s1910_s15  ;;  %1242 = vrot.lane.b32.xlu1 %v1070_v48, %s1907_s8 }
 0x20f   : > { %1216 = vrot.lane.b32.xlu0 %v1088_v60, %s1905_s18  ;;  %1368 = vrot.lane.b32.xlu1 %v1078_v59, %s1911_s16 }
 0x213   : > { %1248 = vrot.lane.b32.xlu0 %v1096_v61, %s1907_s8  ;;  %1280 = vrot.lane.b32.xlu1 %v1104_v62, %s1910_s15 }
 0x217   : > { %1310 = vrot.lane.b32.xlu0 %v1088_v60, %s1908_s9  ;;  %1214 = vrot.lane.b32.xlu1 %v2469_v0, %s1905_s18  ;;  %s1709_s18 = sshll.u32 %s2599_s21, 3 }
 0x21b   : > { %1342 = vrot.lane.b32.xlu0 %v1096_v61, %s1909_s10  ;;  %1246 = vrot.lane.b32.xlu1 %v1095_v1, %s1907_s8 }
 0x21f   : > { %1152 = vrot.lane.b32.xlu0 %v1095_v1, %s1901_s12  ;;  %1278 = vrot.lane.b32.xlu1 %v1103_v2, %s1910_s15 }
 0x220   : > { %v1237_v10 = vpop.permute.xlu0 %1236 }
 0x221   : > { %v1205_v5 = vpop.permute.xlu1 %1204 }
 0x223   : > { %1184 = vrot.lane.b32.xlu0 %v1103_v2, %s1903_s14  ;;  %1376 = vrot.lane.b32.xlu1 %v1129_v4, %s1911_s16 }
 0x224   : > { %v1269_v13 = vpop.permute.xlu0 %1268 }
 0x225   : > { %v1143_v8 = vpop.permute.xlu1 %1142 }
 0x226   : > { %v1388_v53 = vsel %vm810_vm2, %v2357_v14, %v1143_v8 }
 0x227   : > { %1308 = vrot.lane.b32.xlu0 %v2469_v0, %s1908_s9 }
 0x228   : > { %v1203_v15 = vpop.permute.xlu0 %1202 }
 0x229   : > { %v1175_v9 = vpop.permute.xlu1 %1174  ;;  %v1402_v22 = vsel %vm846_vm7, %v1394_v19, %v1203_v15 }
 0x22a   : > { %v1396_v54 = vsel %vm828_vm5, %v1388_v53, %v1175_v9 }
 0x22b   : > { %1340 = vrot.lane.b32.xlu0 %v1095_v1, %s1909_s10  ;;  %s382_s10 = scalar_lea.vmem %s2594_s5, %s1709_s18 }
 0x22c   : > { %v1235_v20 = vpop.permute.xlu0 %1234 }
 0x22d   : > { %v1299_v12 = vpop.permute.xlu1 %1298  ;;  %v1410_v23 = vsel %vm864_vm9, %v1402_v22, %v1235_v20 }
 0x22f   : > { %1372 = vrot.lane.b32.xlu0 %v1103_v2, %s1911_s16 }
 0x231   : > { %v1331_v36 = vpop.permute.xlu1 %1330 }
 0x233   : > { %1374 = vrot.lane.b32.xlu0 %v1104_v62, %s1911_s16 }
 0x235   : > { %v1363_v7 = vpop.permute.xlu1 %1362 }
 0x239   : > { %v1141_v17 = vpop.permute.xlu1 %1140 }
 0x23a   : > { %v1387_v46 = vsel %vm810_vm2, %v2364_v16, %v1141_v17 }
 0x23d   : > { %v1173_v21 = vpop.permute.xlu1 %1172 }
 0x23e   : > { %v1395_v45 = vsel %vm828_vm5, %v1387_v46, %v1173_v21 }
 0x23f   : > { %v1403_v47 = vsel %vm846_vm7, %v1395_v45, %v1205_v5 }
 0x240   : > { %v1209_v24 = vpop.permute.xlu0 %1208  ;;  %v1411_v32 = vsel %vm864_vm9, %v1403_v47, %v1237_v10 }
 0x241   : > { %v1267_v26 = vpop.permute.xlu1 %1266  ;;  %v1420_v58 = vsel %vm1418_vm12, %v1411_v32, %v1269_v13 }
 0x242   : > { %v1419_v27 = vsel %vm1418_vm12, %v1410_v23, %v1267_v26 }
 0x243   : > { %v1428_v28 = vsel %vm1427_vm13, %v1419_v27, %v1299_v12 }
 0x244   : > { %v1437_v31 = vsel %vm1436_vm14, %v1428_v28, %v1331_v36  ;;  %v1147_v33 = vpop.permute.xlu0 %1146 }
 0x245   : > { %v1241_v35 = vpop.permute.xlu1 %1240  ;;  %v1446_v41 = vsel %vm1445_vm15, %v1437_v31, %v1363_v7  ;;  %v1390_v20 = vsel %vm810_vm2, %v2380_v25, %v1147_v33 }
 0x246   : > { %1826 = vmatprep.mubr.msk.f32.mxu1 %vm1470_vm0, %v1446_v41 }
 0x248   : > { %v1273_v34 = vpop.permute.xlu0 %1272 }
 0x249   : > { %v1179_v37 = vpop.permute.xlu1 %1178 }
 0x24a   : > { %v1398_v21 = vsel %vm828_vm5, %v1390_v20, %v1179_v37 }
 0x24c   : > { %v1145_v30 = vpop.permute.xlu0 %1144 }
 0x24d   : > { %v1303_v38 = vpop.permute.xlu1 %1302  ;;  %v1389_v36 = vsel %vm810_vm2, %v2418_v42, %v1145_v30 }
 0x250   : > { %v1177_v39 = vpop.permute.xlu0 %1176 }
 0x251   : > { %v1335_v40 = vpop.permute.xlu1 %1334  ;;  %v1397_v15 = vsel %vm828_vm5, %v1389_v36, %v1177_v39  ;;  %v1744_v36 = vld [vmem:[%s2593_s4] ss:$0 sm:$0xff] }
 0x252   : > { %v1405_v17 = vsel %vm846_vm7, %v1397_v15, %v1209_v24 }
 0x253   : > { %v1413_v22 = vsel %vm864_vm9, %v1405_v17, %v1241_v35 }
 0x254   : > { %v1301_v43 = vpop.permute.xlu0 %1300  ;;  %v1422_v28 = vsel %vm1418_vm12, %v1413_v22, %v1273_v34 }
 0x255   : > { %v1367_v44 = vpop.permute.xlu1 %1366  ;;  %v1429_v59 = vsel %vm1427_vm13, %v1420_v58, %v1301_v43 }
 0x258   : > { %v1333_v49 = vpop.permute.xlu0 %1332 }
 0x259   : > { %v1207_v51 = vpop.permute.xlu1 %1206  ;;  %v1438_v14 = vsel %vm1436_vm14, %v1429_v59, %v1333_v49 }
 0x25a   : > { %v1404_v55 = vsel %vm846_vm7, %v1396_v54, %v1207_v51 }
 0x25c   : > { %v1271_v56 = vpop.permute.xlu0 %1270 }
 0x25d   : > { %v1239_v57 = vpop.permute.xlu1 %1238 }
 0x25e   : > { %v1412_v16 = vsel %vm864_vm9, %v1404_v55, %v1239_v57 }
 0x25f   : > { %v1421_v48 = vsel %vm1418_vm12, %v1412_v16, %v1271_v56 }
 0x260   : > { %v1430_v60 = vsel %vm1427_vm13, %v1421_v48, %v1303_v38 }
 0x261   : > { %v1213_v61 = vpop.permute.xlu0 %1212  ;;  %v1365_v62 = vpop.permute.xlu1 %1364  ;;  %v1439_v1 = vsel %vm1436_vm14, %v1430_v60, %v1335_v40 }
 0x262   : > { %v1447_v2 = vsel %vm1445_vm15, %v1438_v14, %v1365_v62  ;;  %v1448_v3 = vsel %vm1445_vm15, %v1439_v1, %v1367_v44 }
 0x263   : > { %1827 = vmatmul.mubr.msk.f32.vlgmr.msra.gmra.mxu1 %vm1470_vm0, %v1447_v2 }
 0x264   : > { %1829 = vmatprep.mubr.msk.f32.mxu1 %vm1470_vm0, %v1448_v3 }
 0x265   : > { %v1151_v4 = vpop.permute.xlu0 %1150  ;;  %v1245_v5 = vpop.permute.xlu1 %1244 }
 0x266   : > { %v1392_v57 = vsel %vm810_vm2, %v2435_v50, %v1151_v4 }
 0x269   : > { %v1277_v6 = vpop.permute.xlu0 %1276  ;;  %v1183_v8 = vpop.permute.xlu1 %1182 }
 0x26d   : > { %v1149_v9 = vpop.permute.xlu0 %1148  ;;  %v1307_v10 = vpop.permute.xlu1 %1306 }
 0x26e   : > { %v1391_v45 = vsel %vm810_vm2, %v2453_v52, %v1149_v9  ;;  %v1400_v52 = vsel %vm828_vm5, %v1392_v57, %v1183_v8 }
 0x271   : > { %v1181_v12 = vpop.permute.xlu0 %1180  ;;  %v1339_v13 = vpop.permute.xlu1 %1338 }
 0x272   : > { %v1399_v51 = vsel %vm828_vm5, %v1391_v45, %v1181_v12 }
 0x273   : > { %v1407_v55 = vsel %vm846_vm7, %v1399_v51, %v1213_v61 }
 0x275   : > { %v1305_v7 = vpop.permute.xlu0 %1304  ;;  %v1371_v11 = vpop.permute.xlu1 %1370 }
 0x276   : > { %v1431_v24 = vsel %vm1427_vm13, %v1422_v28, %v1305_v7 }
 0x279   : > { %v1337_v18 = vpop.permute.xlu0 %1336  ;;  %v1211_v19 = vpop.permute.xlu1 %1210 }
 0x27a   : > { %v1406_v23 = vsel %vm846_vm7, %v1398_v21, %v1211_v19  ;;  %v1440_v25 = vsel %vm1436_vm14, %v1431_v24, %v1337_v18 }
 0x27d   : > { %v1275_v26 = vpop.permute.xlu0 %1274  ;;  %v1243_v27 = vpop.permute.xlu1 %1242 }
 0x27e   : > { %v1414_v42 = vsel %vm864_vm9, %v1406_v23, %v1243_v27 }
 0x27f   : > { %v1423_v31 = vsel %vm1418_vm12, %v1414_v42, %v1275_v26 }
 0x280   : > { %v1432_v41 = vsel %vm1427_vm13, %v1423_v31, %v1307_v10 }
 0x281   : > { %v1217_v33 = vpop.permute.xlu0 %1216  ;;  %v1369_v37 = vpop.permute.xlu1 %1368  ;;  %v1441_v35 = vsel %vm1436_vm14, %v1432_v41, %v1339_v13 }
 0x282   : > { %v1449_v30 = vsel %vm1445_vm15, %v1440_v25, %v1369_v37  ;;  %v1450_v38 = vsel %vm1445_vm15, %v1441_v35, %v1371_v11 }
 0x283   : > { %1830 = vmatmul.mubr.msk.f32.gmra.mxu1 %vm1470_vm0, %v1449_v30 }
 0x284   : > { %1832 = vmatprep.mubr.msk.f32.mxu1 %vm1470_vm0, %v1450_v38 }
 0x285   : > { %v1249_v34 = vpop.permute.xlu0 %1248  ;;  %v1281_v40 = vpop.permute.xlu1 %1280 }
 0x289   : > { %v1311_v39 = vpop.permute.xlu0 %1310  ;;  %v1215_v43 = vpop.permute.xlu1 %1214 }
 0x28a   : > { %v1408_v48 = vsel %vm846_vm7, %v1400_v52, %v1215_v43 }
 0x28d   : > { %v1343_v46 = vpop.permute.xlu0 %1342  ;;  %v1247_v53 = vpop.permute.xlu1 %1246 }
 0x28e   : > { %v1416_v60 = vsel %vm864_vm9, %v1408_v48, %v1247_v53 }
 0x291   : > { %v1153_v44 = vpop.permute.xlu0 %1152  ;;  %v1279_v58 = vpop.permute.xlu1 %1278 }
 0x292   : > { %v1393_v47 = vsel %vm810_vm2, %v2469_v0, %v1153_v44  ;;  %v1415_v0 = vsel %vm864_vm9, %v1407_v55, %v1245_v5  ;;  %v1425_v61 = vsel %vm1418_vm12, %v1416_v60, %v1279_v58 }
 0x293   : > { %v1424_v62 = vsel %vm1418_vm12, %v1415_v0, %v1277_v6  ;;  %v1434_v4 = vsel %vm1427_vm13, %v1425_v61, %v1311_v39 }
 0x294   : > { %v1443_v6 = vsel %vm1436_vm14, %v1434_v4, %v1343_v46 }
 0x295   : > { %v1185_v49 = vpop.permute.xlu0 %1184  ;;  %v1377_v9 = vpop.permute.xlu1 %1376 }
 0x296   : > { %v1401_v54 = vsel %vm828_vm5, %v1393_v47, %v1185_v49 }
 0x297   : > { %v1409_v32 = vsel %vm846_vm7, %v1401_v54, %v1217_v33 }
 0x298   : > { %v1417_v16 = vsel %vm864_vm9, %v1409_v32, %v1249_v34 }
 0x299   : > { %v1309_v56 = vpop.permute.xlu0 %1308  ;;  %v1426_v14 = vsel %vm1418_vm12, %v1417_v16, %v1281_v40 }
 0x29a   : > { %v1433_v50 = vsel %vm1427_vm13, %v1424_v62, %v1309_v56  ;;  %v1435_v1 = vsel %vm1427_vm13, %v1426_v14, %v2467_v63 }
 0x29b   : > { %v1444_v8 = vsel %vm1436_vm14, %v1435_v1, %v2476_v29 }
 0x29c   : > { %v1453_v63 = vsel %vm1445_vm15, %v1444_v8, %v1377_v9 }
 0x29d   : > { %v1341_v59 = vpop.permute.xlu0 %1340 }
 0x29e   : > { %v1442_v2 = vsel %vm1436_vm14, %v1433_v50, %v1341_v59 }
 0x2a1   : > { %v1373_v3 = vpop.permute.xlu0 %1372 }
 0x2a2   : > { %v1451_v5 = vsel %vm1445_vm15, %v1442_v2, %v1373_v3 }
 0x2a3   : > { %1833 = vmatmul.mubr.msk.f32.gmra.mxu1 %vm1470_vm0, %v1451_v5 }
 0x2a5   : > { %v1375_v10 = vpop.permute.xlu0 %1374 }
 0x2a6   : > { %v1452_v12 = vsel %vm1445_vm15, %v1443_v6, %v1375_v10 }
 0x2a7   : > { %1835 = vmatprep.mubr.msk.f32.mxu1 %vm1470_vm0, %v1452_v12 }
 0x2a8   : > { %1836 = vmatmul.mubr.msk.f32.gmra.mxu1 %vm1470_vm0, %v1453_v63 }
 0x323   : > { %v1828_v13 = vpop.f32.mrf.mxu1 }
 0x324   : > { %v1567_v29 = vadd.f32 %v1828_v13, %v1744_v36 }
 0x325   : > { %v1561_v7 = vpop.f32.mrf.mxu1 }
 0x326   : > { %v1562_v11 = vadd.f32 %v1744_v36, %v1561_v7  ;;  %v1601_v17 = vmax.f32 %v1567_v29, 0.0 }
 0x328   : > { %v1600_v15 = vmax.f32 %v1562_v11, 0.0 }
 0x32a   : > { %1608 = vxpose.xlu0.b32.start [1/8] (short) (narrow) %v1600_v15, 8 }
 0x32e   : > { %1609 = vxpose.xlu0.b32.cont [2/8] (short) (narrow) %v1601_v17, 8 }
 0x343   : > { %v1831_v18 = vpop.f32.mrf.mxu1 }
 0x344   : > { %v1577_v21 = vadd.f32 %v1831_v18, %v1744_v36 }
 0x345   : > { %v1571_v19 = vpop.f32.mrf.mxu1 }
 0x346   : > { %v1572_v20 = vadd.f32 %v1744_v36, %v1571_v19  ;;  %v1603_v23 = vmax.f32 %v1577_v21, 0.0 }
 0x348   : > { %v1602_v22 = vmax.f32 %v1572_v20, 0.0 }
 0x34a   : > { %1610 = vxpose.xlu0.b32.cont [3/8] (short) (narrow) %v1602_v22, 8 }
 0x34e   : > { %1611 = vxpose.xlu0.b32.cont [4/8] (short) (narrow) %v1603_v23, 8 }
 0x363   : > { %v1834_v26 = vpop.f32.mrf.mxu1 }
 0x364   : > { %v1587_v28 = vadd.f32 %v1834_v26, %v1744_v36 }
 0x365   : > { %v1581_v27 = vpop.f32.mrf.mxu1 }
 0x366   : > { %v1582_v42 = vadd.f32 %v1744_v36, %v1581_v27  ;;  %v1605_v25 = vmax.f32 %v1587_v28, 0.0 }
 0x368   : > { %v1604_v31 = vmax.f32 %v1582_v42, 0.0  ;;  %v1837_v24 = vpop.f32.mrf.mxu1 }
 0x369   : > { %v1597_v37 = vadd.f32 %v1837_v24, %v1744_v36 }
 0x36a   : > { %v1591_v41 = vpop.f32.mrf.mxu1  ;;  %1612 = vxpose.xlu0.b32.cont [5/8] (short) (narrow) %v1604_v31, 8 }
 0x36b   : > { %v1592_v33 = vadd.f32 %v1744_v36, %v1591_v41  ;;  %v1607_v30 = vmax.f32 %v1597_v37, 0.0 }
 0x36d   : > { %v1606_v35 = vmax.f32 %v1592_v33, 0.0 }
 0x36e   : > { %1613 = vxpose.xlu0.b32.cont [6/8] (short) (narrow) %v1605_v25, 8 }
 0x372   : > { %1614 = vxpose.xlu0.b32.cont [7/8] (short) (narrow) %v1606_v35, 8 }
 0x376   : > { %1615 = vxpose.xlu0.b32.end [8/8] (short) (narrow) %v1607_v30, 8 }
 0x3d6   : > { %v1624_v38 = vpop.trf.xlu0 }
 0x3d7   : > { %1640 = vst.msk [vmem:[%s382_s10] sm:$0xff] %vm1445_vm15, %v1624_v38 }
 0x3d8 PF: > { %p12_p9 = scmp.ge.s32.totalorder %s1959_s22, 4   ;;  %s2595_s18 = smov %s1893_s19 }
 0x3d9   : > { %s2596_s19 = smov %s1968_s25  ;;  %s2597_s20 = smov %s1959_s22 }
 0x3da   :  { %14 = sbr.rel (!%p12_p9) target bundleno = 2 (0x2), region = 120 }

</bundles_post_ra>
